<compile_context>
chip_gen: v5e
topology: v5e:2x2
jax: 0.10.0
libtpu: 0.0.40
codegen_flags: <defaults>
</compile_context>

<pallas_src>
import functools
import math

import jax
import jax.numpy as jnp
from jax.experimental import pallas as pl
from jax.experimental.pallas import tpu as pltpu


_MATMUL_DTYPE = jnp.bfloat16      # MXU operands; accumulation is always f32.
_MAX_TILE_ROWS = 256              # big enough to amortize per-step overhead,
                                  # small enough for v7x's 64 MiB VMEM budget.
_VMEM_LIMIT = 32 * 1024 * 1024


def _round_up(x, m):
    return (x + m - 1) // m * m


def _choose_tile(rows, align=16):
    """Row tile (multiple of 16, capped) and padded row count."""
    tr = min(_MAX_TILE_ROWS, _round_up(rows, align))
    return tr, _round_up(rows, tr)


# ----------------------------- Pallas kernels ------------------------------

def _dense(x, w_ref, b_ref):
    """bf16 MXU matmul with f32 accumulation; bias add in f32."""
    w = w_ref[...].astype(_MATMUL_DTYPE)
    y = jnp.dot(x.astype(_MATMUL_DTYPE), w, preferred_element_type=jnp.float32)
    return y + b_ref[...]


def _fused_mlp_kernel(*refs, n_layers, final_relu):
    """x -> [Linear(+ReLU)] * n_layers, all weights VMEM-resident."""
    x_ref = refs[0]
    o_ref = refs[-1]
    p = refs[1:1 + 2 * n_layers]
    x = x_ref[...]
    for i in range(n_layers):
        x = _dense(x, p[2 * i], p[2 * i + 1])
        if i < n_layers - 1 or final_relu:
            x = jnp.maximum(x, 0.0)
    o_ref[...] = x.astype(o_ref.dtype)


def _fused_graphconv_kernel(*refs, k, n_wn, n_fin, c_mid):
    """Fused neighborhood conv for one row tile.

    rel_ref  : (k, tr, rel_dim)   relative coordinates per neighbor
    feat_ref : (k, tr, c_in)      gathered neighbor features
    weights  : weight-net layers then output-MLP layers (w, b interleaved)
    out      : (tr, c_out)
    """
    rel_ref, feat_ref = refs[0], refs[1]
    o_ref = refs[-1]
    p = refs[2:2 + 2 * (n_wn + n_fin)]
    wn = [(p[2 * i], p[2 * i + 1]) for i in range(n_wn)]
    fin = [(p[2 * (n_wn + i)], p[2 * (n_wn + i) + 1]) for i in range(n_fin)]

    acc = [None] * c_mid                       # lane-dense agg chunks (f32, VMEM)
    for kk in range(k):                        # k is small & static -> unrolled
        x = rel_ref[kk]                        # (tr, rel_dim)
        for (w, b) in wn:                      # weight-net MLP (ReLU every layer)
            x = jnp.maximum(_dense(x, w, b), 0.0)
        fk = feat_ref[kk].astype(jnp.float32)  # (tr, c_in), f32 elementwise path
        for c in range(c_mid):                 # outer-product accumulate over k
            contrib = x[:, c:c + 1] * fk
            acc[c] = contrib if acc[c] is None else acc[c] + contrib
    y = jnp.concatenate(acc, axis=1)           # (tr, c_mid * c_in), stays in VMEM
    for i, (w, b) in enumerate(fin):           # output MLP
        y = _dense(y, w, b)
        if i < n_fin - 1:
            y = jnp.maximum(y, 0.0)
    o_ref[...] = y.astype(o_ref.dtype)


# --------------------------- pallas_call wrappers ---------------------------

def _weight_inputs(layers):
    """Flattened (w, b) arrays plus constant-index full-block BlockSpecs."""
    flat, specs = [], []
    for lyr in layers:
        w = lyr["w"]
        b = lyr["b"].reshape(1, -1)
        flat += [w, b]
        specs += [pl.BlockSpec(w.shape, lambda i: (0, 0)),
                  pl.BlockSpec(b.shape, lambda i: (0, 0))]
    return flat, specs


def pallas_mlp(x, layers, *, final_relu):
    """(rows, cin) -> fused MLP -> (rows, cout); single pallas_call."""
    rows, cin = x.shape
    cout = layers[-1]["w"].shape[1]
    tr, rows_p = _choose_tile(rows)
    x = x.astype(_MATMUL_DTYPE)
    if rows_p != rows:
        x = jnp.pad(x, ((0, rows_p - rows), (0, 0)))
    flat, wspecs = _weight_inputs(layers)
    out = pl.pallas_call(
        functools.partial(_fused_mlp_kernel, n_layers=len(layers),
                          final_relu=final_relu),
        out_shape=jax.ShapeDtypeStruct((rows_p, cout), jnp.float32),
        grid_spec=pltpu.PrefetchScalarGridSpec(
            num_scalar_prefetch=0,
            grid=(rows_p // tr,),
            in_specs=[pl.BlockSpec((tr, cin), lambda i: (i, 0))] + wspecs,
            out_specs=pl.BlockSpec((tr, cout), lambda i: (i, 0))),
        compiler_params=pltpu.CompilerParams(
            dimension_semantics=("parallel",),
            vmem_limit_bytes=_VMEM_LIMIT),
    )(x, *flat)
    return out[:rows]


def pallas_graphconv(rel, nbr_feats, weightnet, final, *, c_mid):
    """rel (rows, k, rel_dim), nbr_feats (rows, k, c_in) -> (rows, c_out)."""
    rows, k, rel_dim = rel.shape
    c_in = nbr_feats.shape[-1]
    c_out = final[-1]["w"].shape[1]
    tr, rows_p = _choose_tile(rows)

    rel = rel.astype(_MATMUL_DTYPE)
    nbr_feats = nbr_feats.astype(_MATMUL_DTYPE)
    if rows_p != rows:
        pad = ((0, rows_p - rows), (0, 0), (0, 0))
        rel = jnp.pad(rel, pad)
        nbr_feats = jnp.pad(nbr_feats, pad)
    # Put the (small, static) neighbor axis first so each per-neighbor slice in
    # the kernel is a clean 2-D (tr, C) slab.
    rel_t = jnp.transpose(rel, (1, 0, 2))          # (k, rows_p, rel_dim)
    nbr_t = jnp.transpose(nbr_feats, (1, 0, 2))    # (k, rows_p, c_in)

    flat, wspecs = _weight_inputs(weightnet + final)
    out = pl.pallas_call(
        functools.partial(_fused_graphconv_kernel, k=k, n_wn=len(weightnet),
                          n_fin=len(final), c_mid=c_mid),
        out_shape=jax.ShapeDtypeStruct((rows_p, c_out), jnp.float32),
        grid_spec=pltpu.PrefetchScalarGridSpec(
            num_scalar_prefetch=0,
            grid=(rows_p // tr,),
            in_specs=[pl.BlockSpec((k, tr, rel_dim), lambda i: (0, i, 0)),
                      pl.BlockSpec((k, tr, c_in), lambda i: (0, i, 0))] + wspecs,
            out_specs=pl.BlockSpec((tr, c_out), lambda i: (i, 0))),
        compiler_params=pltpu.CompilerParams(
            dimension_semantics=("parallel",),
            vmem_limit_bytes=_VMEM_LIMIT),
    )(rel_t, nbr_t, *flat)
    return out[:rows]


# ------------------------- parameters & glue (JAX) --------------------------

def _init_linear(key, cin, cout):
    kw, kb = jax.random.split(key)
    bound = 1.0 / math.sqrt(cin)
    w = jax.random.uniform(kw, (cin, cout), jnp.float32, -bound, bound)
    b = jax.random.uniform(kb, (cout,), jnp.float32, -bound, bound)
    return {"w": w, "b": b}


def _init_mlp(key, sizes):
    keys = jax.random.split(key, len(sizes) - 1)
    return [_init_linear(kk, a, b) for kk, a, b in zip(keys, sizes[:-1], sizes[1:])]


def _init_graphconv(key, *, in_size, out_size, rel_size, neighbor_count,
                    weight_hidden=(8, 8), c_mid=4, final_hidden=(16,)):
    # TODO(synk): graphconv.GraphConv internals unavailable; fixed internal
    # hidden sizes for the weight-net / output MLP of the neighborhood conv.
    k1, k2 = jax.random.split(key)
    return {
        "weightnet": _init_mlp(k1, [rel_size] + list(weight_hidden) + [c_mid]),
        "final": _init_mlp(k2, [c_mid * in_size] + list(final_hidden) + [out_size]),
        "neighbors": neighbor_count,
        "c_mid": c_mid,
    }


def _knn_gather(query_pts, key_pts, feats, k):
    # query_pts (B, Nq, D); key_pts (B, Nk, D); feats (B, Nk, C)
    d2 = jnp.sum((query_pts[:, :, None, :] - key_pts[:, None, :, :]) ** 2, axis=-1)
    _, idx = jax.lax.top_k(-d2, k)                       # (B, Nq, k)
    gather = jax.vmap(lambda arr, ix: arr[ix])           # per-batch fancy gather
    nbr_pts = gather(key_pts, idx)                       # (B, Nq, k, D)
    nbr_feats = gather(feats, idx)                       # (B, Nq, k, C)
    rel = nbr_pts - query_pts[:, :, None, :]             # relative coordinates
    return rel, nbr_feats


def _graphconv_apply(params, query_pts, key_pts, feats):
    B, Nq, dim = query_pts.shape
    k = params["neighbors"]
    rel, nbr_feats = _knn_gather(query_pts, key_pts, feats, k)
    out = pallas_graphconv(rel.reshape(B * Nq, k, dim),
                           nbr_feats.reshape(B * Nq, k, -1),
                           params["weightnet"], params["final"],
                           c_mid=params["c_mid"])
    return out.reshape(B, Nq, -1)


def _settransform_apply(layers, x):
    # SetTransform(reduction='none'): pointwise MLP over the set dimension.
    B, N, C = x.shape
    y = pallas_mlp(x.reshape(B * N, C), layers, final_relu=False)
    return y.reshape(B, N, -1)


class TimeEncoder:
    def __init__(self, out_dim):
        self.out_dim = out_dim


def init_temporal_graph_conv(key, *, feat_size, latent_sizes, neighborhood_sizes,
                             combine_hidden, target_size, neighbors, timesteps,
                             pos_dim, time_encoder, target_type):
    assert len(latent_sizes) == len(neighborhood_sizes)
    params = {"layers": []}
    in_size = feat_size
    keys = jax.random.split(key, 3 * len(latent_sizes) + 1)
    ki = 0
    for ls, n_sz in zip(latent_sizes, neighborhood_sizes):
        space = _init_graphconv(keys[ki], in_size=in_size, out_size=n_sz,
                                rel_size=pos_dim, neighbor_count=neighbors)
        ki += 1
        time = _init_graphconv(keys[ki], in_size=in_size + n_sz, out_size=n_sz,
                               rel_size=time_encoder.out_dim,
                               neighbor_count=timesteps)
        ki += 1
        comb = _init_mlp(keys[ki], [in_size + 2 * n_sz] + list(combine_hidden) + [ls])
        ki += 1
        params["layers"].append({"space": space, "time": time, "comb": comb})
        in_size = ls

    if target_type == "space":
        rel_size, nc = pos_dim, neighbors
    elif target_type == "time":
        rel_size, nc = time_encoder.out_dim, timesteps
    else:
        raise ValueError(target_type)
    params["target"] = _init_graphconv(keys[ki], in_size=in_size,
                                       out_size=target_size, rel_size=rel_size,
                                       neighbor_count=nc)
    return params


def temporal_graph_conv_forward(params, data, ids, space_pts, time_pts,
                                target_pts, query_pts):
    # encode_input
    space_in = data
    for layer in params["layers"]:
        space_nei = _graphconv_apply(layer["space"], space_pts, space_pts, space_in)
        time_in = jnp.concatenate([space_in, space_nei], axis=2)
        time_nei = _graphconv_apply(layer["time"], time_pts, time_pts, time_in)
        combined = jnp.concatenate([space_in, space_nei, time_nei], axis=2)
        space_in = _settransform_apply(layer["comb"], combined)
    # encode_queries
    query_feats = _graphconv_apply(params["target"], query_pts, target_pts, space_in)
    return query_feats


# ---------------------------------- main ------------------------------------

if __name__ == "__main__":
    key = jax.random.PRNGKey(0)
    B, N, Nq = 2, 16, 8
    feat_size, pos_dim, t_dim = 6, 3, 5
    target_size = 12
    time_encoder = TimeEncoder(t_dim)

    kp, kd, ks, kt, kq = jax.random.split(key, 5)
    params = init_temporal_graph_conv(
        kp,
        feat_size=feat_size, latent_sizes=[16, 16], neighborhood_sizes=[8, 8],
        combine_hidden=[16], target_size=target_size, neighbors=4, timesteps=4,
        pos_dim=pos_dim, time_encoder=time_encoder, target_type="time")

    data = jax.random.normal(kd, (B, N, feat_size), jnp.float32)
    space_pts = jax.random.normal(ks, (B, N, pos_dim), jnp.float32)
    time_pts = jax.random.normal(kt, (B, N, t_dim), jnp.float32)
    target_pts = time_pts                                  # target_type='time'
    query_pts = jax.random.normal(kq, (B, Nq, t_dim), jnp.float32)
    ids = jnp.tile(jnp.arange(N)[None, :], (B, 1))         # unused (signature parity)

    out = temporal_graph_conv_forward(params, data, ids, space_pts, time_pts,
                                      target_pts, query_pts)
    out = jax.block_until_ready(out)
    assert out.shape == (B, Nq, target_size), out.shape
    assert bool(jnp.all(jnp.isfinite(out)))
    print("KERNEL_OK")
</pallas_src>

<mosaic_0001>
module attributes {stable_mosaic.version = 11 : i64} {
  func.func @_fused_graphconv_kernel(%arg0: i32, %arg1: memref<4x32x3xbf16, #tpu.memory_space<vmem>>, %arg2: memref<4x32x6xbf16, #tpu.memory_space<vmem>>, %arg3: memref<3x8xf32, #tpu.memory_space<vmem>>, %arg4: memref<1x8xf32, #tpu.memory_space<vmem>>, %arg5: memref<8x8xf32, #tpu.memory_space<vmem>>, %arg6: memref<1x8xf32, #tpu.memory_space<vmem>>, %arg7: memref<8x4xf32, #tpu.memory_space<vmem>>, %arg8: memref<1x4xf32, #tpu.memory_space<vmem>>, %arg9: memref<24x16xf32, #tpu.memory_space<vmem>>, %arg10: memref<1x16xf32, #tpu.memory_space<vmem>>, %arg11: memref<16x8xf32, #tpu.memory_space<vmem>>, %arg12: memref<1x8xf32, #tpu.memory_space<vmem>>, %arg13: memref<32x8xf32, #tpu.memory_space<vmem>>) attributes {dimension_semantics = [#tpu.dimension_semantics<parallel>], iteration_bounds = array<i64: 1>, scalar_prefetch = 0 : i64, scratch_operands = 0 : i64, tpu.core_type = #tpu.core_type<tc>, window_params = [{transform_indices = @transform_0, window_bounds = array<i64: 4, 32, 3>}, {transform_indices = @transform_1, window_bounds = array<i64: 4, 32, 6>}, {pipeline_mode = #tpu.pipeline_mode<synchronous>, transform_indices = @transform_2, window_bounds = array<i64: 3, 8>}, {pipeline_mode = #tpu.pipeline_mode<synchronous>, transform_indices = @transform_3, window_bounds = array<i64: 1, 8>}, {pipeline_mode = #tpu.pipeline_mode<synchronous>, transform_indices = @transform_4, window_bounds = array<i64: 8, 8>}, {pipeline_mode = #tpu.pipeline_mode<synchronous>, transform_indices = @transform_5, window_bounds = array<i64: 1, 8>}, {pipeline_mode = #tpu.pipeline_mode<synchronous>, transform_indices = @transform_6, window_bounds = array<i64: 8, 4>}, {pipeline_mode = #tpu.pipeline_mode<synchronous>, transform_indices = @transform_7, window_bounds = array<i64: 1, 4>}, {pipeline_mode = #tpu.pipeline_mode<synchronous>, transform_indices = @transform_8, window_bounds = array<i64: 24, 16>}, {pipeline_mode = #tpu.pipeline_mode<synchronous>, transform_indices = @transform_9, window_bounds = array<i64: 1, 16>}, {pipeline_mode = #tpu.pipeline_mode<synchronous>, transform_indices = @transform_10, window_bounds = array<i64: 16, 8>}, {pipeline_mode = #tpu.pipeline_mode<synchronous>, transform_indices = @transform_11, window_bounds = array<i64: 1, 8>}, {transform_indices = @transform_12, window_bounds = array<i64: 32, 8>}]} {
    %c0 = arith.constant 0 : index
    %c0_0 = arith.constant 0 : index
    %c0_1 = arith.constant 0 : index
    %0 = vector.load %arg1[%c0, %c0_0, %c0_1] : memref<4x32x3xbf16, #tpu.memory_space<vmem>>, vector<1x32x3xbf16>
    %1 = vector.shape_cast %0 : vector<1x32x3xbf16> to vector<32x3xbf16>
    %c0_2 = arith.constant 0 : index
    %c0_3 = arith.constant 0 : index
    %2 = vector.load %arg3[%c0_2, %c0_3] : memref<3x8xf32, #tpu.memory_space<vmem>>, vector<3x8xf32>
    %3 = arith.truncf %2 : vector<3x8xf32> to vector<3x8xbf16>
    %cst = arith.constant dense<0.000000e+00> : vector<32x8xf32>
    %4 = tpu.matmul %1, %3, %cst {dimension_numbers = #tpu.dot_dimension_numbers<[1], [0], [0], [1], [0, 0, 1, 1], [], []>} : vector<32x3xbf16>, vector<3x8xbf16>, vector<32x8xf32> -> vector<32x8xf32>
    %c0_4 = arith.constant 0 : index
    %c0_5 = arith.constant 0 : index
    %5 = vector.load %arg4[%c0_4, %c0_5] : memref<1x8xf32, #tpu.memory_space<vmem>>, vector<1x8xf32>
    %6 = vector.broadcast %5 : vector<1x8xf32> to vector<32x8xf32>
    %7 = arith.addf %4, %6 : vector<32x8xf32>
    %cst_6 = arith.constant 0.000000e+00 : f32
    %8 = vector.broadcast %cst_6 : f32 to vector<32x8xf32>
    %9 = arith.maximumf %7, %8 : vector<32x8xf32>
    %c0_7 = arith.constant 0 : index
    %c0_8 = arith.constant 0 : index
    %10 = vector.load %arg5[%c0_7, %c0_8] : memref<8x8xf32, #tpu.memory_space<vmem>>, vector<8x8xf32>
    %11 = arith.truncf %10 : vector<8x8xf32> to vector<8x8xbf16>
    %12 = arith.truncf %9 : vector<32x8xf32> to vector<32x8xbf16>
    %cst_9 = arith.constant dense<0.000000e+00> : vector<32x8xf32>
    %13 = tpu.matmul %12, %11, %cst_9 {dimension_numbers = #tpu.dot_dimension_numbers<[1], [0], [0], [1], [0, 0, 1, 1], [], []>} : vector<32x8xbf16>, vector<8x8xbf16>, vector<32x8xf32> -> vector<32x8xf32>
    %c0_10 = arith.constant 0 : index
    %c0_11 = arith.constant 0 : index
    %14 = vector.load %arg6[%c0_10, %c0_11] : memref<1x8xf32, #tpu.memory_space<vmem>>, vector<1x8xf32>
    %15 = vector.broadcast %14 : vector<1x8xf32> to vector<32x8xf32>
    %16 = arith.addf %13, %15 : vector<32x8xf32>
    %cst_12 = arith.constant 0.000000e+00 : f32
    %17 = vector.broadcast %cst_12 : f32 to vector<32x8xf32>
    %18 = arith.maximumf %16, %17 : vector<32x8xf32>
    %c0_13 = arith.constant 0 : index
    %c0_14 = arith.constant 0 : index
    %19 = vector.load %arg7[%c0_13, %c0_14] : memref<8x4xf32, #tpu.memory_space<vmem>>, vector<8x4xf32>
    %20 = arith.truncf %19 : vector<8x4xf32> to vector<8x4xbf16>
    %21 = arith.truncf %18 : vector<32x8xf32> to vector<32x8xbf16>
    %cst_15 = arith.constant dense<0.000000e+00> : vector<32x4xf32>
    %22 = tpu.matmul %21, %20, %cst_15 {dimension_numbers = #tpu.dot_dimension_numbers<[1], [0], [0], [1], [0, 0, 1, 1], [], []>} : vector<32x8xbf16>, vector<8x4xbf16>, vector<32x4xf32> -> vector<32x4xf32>
    %c0_16 = arith.constant 0 : index
    %c0_17 = arith.constant 0 : index
    %23 = vector.load %arg8[%c0_16, %c0_17] : memref<1x4xf32, #tpu.memory_space<vmem>>, vector<1x4xf32>
    %24 = vector.broadcast %23 : vector<1x4xf32> to vector<32x4xf32>
    %25 = arith.addf %22, %24 : vector<32x4xf32>
    %cst_18 = arith.constant 0.000000e+00 : f32
    %26 = vector.broadcast %cst_18 : f32 to vector<32x4xf32>
    %27 = arith.maximumf %25, %26 : vector<32x4xf32>
    %c0_19 = arith.constant 0 : index
    %c0_20 = arith.constant 0 : index
    %c0_21 = arith.constant 0 : index
    %28 = vector.load %arg2[%c0_19, %c0_20, %c0_21] : memref<4x32x6xbf16, #tpu.memory_space<vmem>>, vector<1x32x6xbf16>
    %29 = vector.shape_cast %28 : vector<1x32x6xbf16> to vector<32x6xbf16>
    %30 = arith.extf %29 : vector<32x6xbf16> to vector<32x6xf32>
    %31 = vector.extract_strided_slice %27 {offsets = [0, 0], sizes = [32, 1], strides = [1, 1]} : vector<32x4xf32> to vector<32x1xf32>
    %32 = vector.broadcast %31 : vector<32x1xf32> to vector<32x6xf32>
    %33 = arith.mulf %32, %30 : vector<32x6xf32>
    %34 = vector.extract_strided_slice %27 {offsets = [0, 1], sizes = [32, 1], strides = [1, 1]} : vector<32x4xf32> to vector<32x1xf32>
    %35 = vector.broadcast %34 : vector<32x1xf32> to vector<32x6xf32>
    %36 = arith.mulf %35, %30 : vector<32x6xf32>
    %37 = vector.extract_strided_slice %27 {offsets = [0, 2], sizes = [32, 1], strides = [1, 1]} : vector<32x4xf32> to vector<32x1xf32>
    %38 = vector.broadcast %37 : vector<32x1xf32> to vector<32x6xf32>
    %39 = arith.mulf %38, %30 : vector<32x6xf32>
    %40 = vector.extract_strided_slice %27 {offsets = [0, 3], sizes = [32, 1], strides = [1, 1]} : vector<32x4xf32> to vector<32x1xf32>
    %41 = vector.broadcast %40 : vector<32x1xf32> to vector<32x6xf32>
    %42 = arith.mulf %41, %30 : vector<32x6xf32>
    %c1 = arith.constant 1 : index
    %c0_22 = arith.constant 0 : index
    %c0_23 = arith.constant 0 : index
    %43 = vector.load %arg1[%c1, %c0_22, %c0_23] : memref<4x32x3xbf16, #tpu.memory_space<vmem>>, vector<1x32x3xbf16>
    %44 = vector.shape_cast %43 : vector<1x32x3xbf16> to vector<32x3xbf16>
    %c0_24 = arith.constant 0 : index
    %c0_25 = arith.constant 0 : index
    %45 = vector.load %arg3[%c0_24, %c0_25] : memref<3x8xf32, #tpu.memory_space<vmem>>, vector<3x8xf32>
    %46 = arith.truncf %45 : vector<3x8xf32> to vector<3x8xbf16>
    %cst_26 = arith.constant dense<0.000000e+00> : vector<32x8xf32>
    %47 = tpu.matmul %44, %46, %cst_26 {dimension_numbers = #tpu.dot_dimension_numbers<[1], [0], [0], [1], [0, 0, 1, 1], [], []>} : vector<32x3xbf16>, vector<3x8xbf16>, vector<32x8xf32> -> vector<32x8xf32>
    %c0_27 = arith.constant 0 : index
    %c0_28 = arith.constant 0 : index
    %48 = vector.load %arg4[%c0_27, %c0_28] : memref<1x8xf32, #tpu.memory_space<vmem>>, vector<1x8xf32>
    %49 = vector.broadcast %48 : vector<1x8xf32> to vector<32x8xf32>
    %50 = arith.addf %47, %49 : vector<32x8xf32>
    %cst_29 = arith.constant 0.000000e+00 : f32
    %51 = vector.broadcast %cst_29 : f32 to vector<32x8xf32>
    %52 = arith.maximumf %50, %51 : vector<32x8xf32>
    %c0_30 = arith.constant 0 : index
    %c0_31 = arith.constant 0 : index
    %53 = vector.load %arg5[%c0_30, %c0_31] : memref<8x8xf32, #tpu.memory_space<vmem>>, vector<8x8xf32>
    %54 = arith.truncf %53 : vector<8x8xf32> to vector<8x8xbf16>
    %55 = arith.truncf %52 : vector<32x8xf32> to vector<32x8xbf16>
    %cst_32 = arith.constant dense<0.000000e+00> : vector<32x8xf32>
    %56 = tpu.matmul %55, %54, %cst_32 {dimension_numbers = #tpu.dot_dimension_numbers<[1], [0], [0], [1], [0, 0, 1, 1], [], []>} : vector<32x8xbf16>, vector<8x8xbf16>, vector<32x8xf32> -> vector<32x8xf32>
    %c0_33 = arith.constant 0 : index
    %c0_34 = arith.constant 0 : index
    %57 = vector.load %arg6[%c0_33, %c0_34] : memref<1x8xf32, #tpu.memory_space<vmem>>, vector<1x8xf32>
    %58 = vector.broadcast %57 : vector<1x8xf32> to vector<32x8xf32>
    %59 = arith.addf %56, %58 : vector<32x8xf32>
    %cst_35 = arith.constant 0.000000e+00 : f32
    %60 = vector.broadcast %cst_35 : f32 to vector<32x8xf32>
    %61 = arith.maximumf %59, %60 : vector<32x8xf32>
    %c0_36 = arith.constant 0 : index
    %c0_37 = arith.constant 0 : index
    %62 = vector.load %arg7[%c0_36, %c0_37] : memref<8x4xf32, #tpu.memory_space<vmem>>, vector<8x4xf32>
    %63 = arith.truncf %62 : vector<8x4xf32> to vector<8x4xbf16>
    %64 = arith.truncf %61 : vector<32x8xf32> to vector<32x8xbf16>
    %cst_38 = arith.constant dense<0.000000e+00> : vector<32x4xf32>
    %65 = tpu.matmul %64, %63, %cst_38 {dimension_numbers = #tpu.dot_dimension_numbers<[1], [0], [0], [1], [0, 0, 1, 1], [], []>} : vector<32x8xbf16>, vector<8x4xbf16>, vector<32x4xf32> -> vector<32x4xf32>
    %c0_39 = arith.constant 0 : index
    %c0_40 = arith.constant 0 : index
    %66 = vector.load %arg8[%c0_39, %c0_40] : memref<1x4xf32, #tpu.memory_space<vmem>>, vector<1x4xf32>
    %67 = vector.broadcast %66 : vector<1x4xf32> to vector<32x4xf32>
    %68 = arith.addf %65, %67 : vector<32x4xf32>
    %cst_41 = arith.constant 0.000000e+00 : f32
    %69 = vector.broadcast %cst_41 : f32 to vector<32x4xf32>
    %70 = arith.maximumf %68, %69 : vector<32x4xf32>
    %c1_42 = arith.constant 1 : index
    %c0_43 = arith.constant 0 : index
    %c0_44 = arith.constant 0 : index
    %71 = vector.load %arg2[%c1_42, %c0_43, %c0_44] : memref<4x32x6xbf16, #tpu.memory_space<vmem>>, vector<1x32x6xbf16>
    %72 = vector.shape_cast %71 : vector<1x32x6xbf16> to vector<32x6xbf16>
    %73 = arith.extf %72 : vector<32x6xbf16> to vector<32x6xf32>
    %74 = vector.extract_strided_slice %70 {offsets = [0, 0], sizes = [32, 1], strides = [1, 1]} : vector<32x4xf32> to vector<32x1xf32>
    %75 = vector.broadcast %74 : vector<32x1xf32> to vector<32x6xf32>
    %76 = arith.mulf %75, %73 : vector<32x6xf32>
    %77 = arith.addf %33, %76 : vector<32x6xf32>
    %78 = vector.extract_strided_slice %70 {offsets = [0, 1], sizes = [32, 1], strides = [1, 1]} : vector<32x4xf32> to vector<32x1xf32>
    %79 = vector.broadcast %78 : vector<32x1xf32> to vector<32x6xf32>
    %80 = arith.mulf %79, %73 : vector<32x6xf32>
    %81 = arith.addf %36, %80 : vector<32x6xf32>
    %82 = vector.extract_strided_slice %70 {offsets = [0, 2], sizes = [32, 1], strides = [1, 1]} : vector<32x4xf32> to vector<32x1xf32>
    %83 = vector.broadcast %82 : vector<32x1xf32> to vector<32x6xf32>
    %84 = arith.mulf %83, %73 : vector<32x6xf32>
    %85 = arith.addf %39, %84 : vector<32x6xf32>
    %86 = vector.extract_strided_slice %70 {offsets = [0, 3], sizes = [32, 1], strides = [1, 1]} : vector<32x4xf32> to vector<32x1xf32>
    %87 = vector.broadcast %86 : vector<32x1xf32> to vector<32x6xf32>
    %88 = arith.mulf %87, %73 : vector<32x6xf32>
    %89 = arith.addf %42, %88 : vector<32x6xf32>
    %c2 = arith.constant 2 : index
    %c0_45 = arith.constant 0 : index
    %c0_46 = arith.constant 0 : index
    %90 = vector.load %arg1[%c2, %c0_45, %c0_46] : memref<4x32x3xbf16, #tpu.memory_space<vmem>>, vector<1x32x3xbf16>
    %91 = vector.shape_cast %90 : vector<1x32x3xbf16> to vector<32x3xbf16>
    %c0_47 = arith.constant 0 : index
    %c0_48 = arith.constant 0 : index
    %92 = vector.load %arg3[%c0_47, %c0_48] : memref<3x8xf32, #tpu.memory_space<vmem>>, vector<3x8xf32>
    %93 = arith.truncf %92 : vector<3x8xf32> to vector<3x8xbf16>
    %cst_49 = arith.constant dense<0.000000e+00> : vector<32x8xf32>
    %94 = tpu.matmul %91, %93, %cst_49 {dimension_numbers = #tpu.dot_dimension_numbers<[1], [0], [0], [1], [0, 0, 1, 1], [], []>} : vector<32x3xbf16>, vector<3x8xbf16>, vector<32x8xf32> -> vector<32x8xf32>
    %c0_50 = arith.constant 0 : index
    %c0_51 = arith.constant 0 : index
    %95 = vector.load %arg4[%c0_50, %c0_51] : memref<1x8xf32, #tpu.memory_space<vmem>>, vector<1x8xf32>
    %96 = vector.broadcast %95 : vector<1x8xf32> to vector<32x8xf32>
    %97 = arith.addf %94, %96 : vector<32x8xf32>
    %cst_52 = arith.constant 0.000000e+00 : f32
    %98 = vector.broadcast %cst_52 : f32 to vector<32x8xf32>
    %99 = arith.maximumf %97, %98 : vector<32x8xf32>
    %c0_53 = arith.constant 0 : index
    %c0_54 = arith.constant 0 : index
    %100 = vector.load %arg5[%c0_53, %c0_54] : memref<8x8xf32, #tpu.memory_space<vmem>>, vector<8x8xf32>
    %101 = arith.truncf %100 : vector<8x8xf32> to vector<8x8xbf16>
    %102 = arith.truncf %99 : vector<32x8xf32> to vector<32x8xbf16>
    %cst_55 = arith.constant dense<0.000000e+00> : vector<32x8xf32>
    %103 = tpu.matmul %102, %101, %cst_55 {dimension_numbers = #tpu.dot_dimension_numbers<[1], [0], [0], [1], [0, 0, 1, 1], [], []>} : vector<32x8xbf16>, vector<8x8xbf16>, vector<32x8xf32> -> vector<32x8xf32>
    %c0_56 = arith.constant 0 : index
    %c0_57 = arith.constant 0 : index
    %104 = vector.load %arg6[%c0_56, %c0_57] : memref<1x8xf32, #tpu.memory_space<vmem>>, vector<1x8xf32>
    %105 = vector.broadcast %104 : vector<1x8xf32> to vector<32x8xf32>
    %106 = arith.addf %103, %105 : vector<32x8xf32>
    %cst_58 = arith.constant 0.000000e+00 : f32
    %107 = vector.broadcast %cst_58 : f32 to vector<32x8xf32>
    %108 = arith.maximumf %106, %107 : vector<32x8xf32>
    %c0_59 = arith.constant 0 : index
    %c0_60 = arith.constant 0 : index
    %109 = vector.load %arg7[%c0_59, %c0_60] : memref<8x4xf32, #tpu.memory_space<vmem>>, vector<8x4xf32>
    %110 = arith.truncf %109 : vector<8x4xf32> to vector<8x4xbf16>
    %111 = arith.truncf %108 : vector<32x8xf32> to vector<32x8xbf16>
    %cst_61 = arith.constant dense<0.000000e+00> : vector<32x4xf32>
    %112 = tpu.matmul %111, %110, %cst_61 {dimension_numbers = #tpu.dot_dimension_numbers<[1], [0], [0], [1], [0, 0, 1, 1], [], []>} : vector<32x8xbf16>, vector<8x4xbf16>, vector<32x4xf32> -> vector<32x4xf32>
    %c0_62 = arith.constant 0 : index
    %c0_63 = arith.constant 0 : index
    %113 = vector.load %arg8[%c0_62, %c0_63] : memref<1x4xf32, #tpu.memory_space<vmem>>, vector<1x4xf32>
    %114 = vector.broadcast %113 : vector<1x4xf32> to vector<32x4xf32>
    %115 = arith.addf %112, %114 : vector<32x4xf32>
    %cst_64 = arith.constant 0.000000e+00 : f32
    %116 = vector.broadcast %cst_64 : f32 to vector<32x4xf32>
    %117 = arith.maximumf %115, %116 : vector<32x4xf32>
    %c2_65 = arith.constant 2 : index
    %c0_66 = arith.constant 0 : index
    %c0_67 = arith.constant 0 : index
    %118 = vector.load %arg2[%c2_65, %c0_66, %c0_67] : memref<4x32x6xbf16, #tpu.memory_space<vmem>>, vector<1x32x6xbf16>
    %119 = vector.shape_cast %118 : vector<1x32x6xbf16> to vector<32x6xbf16>
    %120 = arith.extf %119 : vector<32x6xbf16> to vector<32x6xf32>
    %121 = vector.extract_strided_slice %117 {offsets = [0, 0], sizes = [32, 1], strides = [1, 1]} : vector<32x4xf32> to vector<32x1xf32>
    %122 = vector.broadcast %121 : vector<32x1xf32> to vector<32x6xf32>
    %123 = arith.mulf %122, %120 : vector<32x6xf32>
    %124 = arith.addf %77, %123 : vector<32x6xf32>
    %125 = vector.extract_strided_slice %117 {offsets = [0, 1], sizes = [32, 1], strides = [1, 1]} : vector<32x4xf32> to vector<32x1xf32>
    %126 = vector.broadcast %125 : vector<32x1xf32> to vector<32x6xf32>
    %127 = arith.mulf %126, %120 : vector<32x6xf32>
    %128 = arith.addf %81, %127 : vector<32x6xf32>
    %129 = vector.extract_strided_slice %117 {offsets = [0, 2], sizes = [32, 1], strides = [1, 1]} : vector<32x4xf32> to vector<32x1xf32>
    %130 = vector.broadcast %129 : vector<32x1xf32> to vector<32x6xf32>
    %131 = arith.mulf %130, %120 : vector<32x6xf32>
    %132 = arith.addf %85, %131 : vector<32x6xf32>
    %133 = vector.extract_strided_slice %117 {offsets = [0, 3], sizes = [32, 1], strides = [1, 1]} : vector<32x4xf32> to vector<32x1xf32>
    %134 = vector.broadcast %133 : vector<32x1xf32> to vector<32x6xf32>
    %135 = arith.mulf %134, %120 : vector<32x6xf32>
    %136 = arith.addf %89, %135 : vector<32x6xf32>
    %c3 = arith.constant 3 : index
    %c0_68 = arith.constant 0 : index
    %c0_69 = arith.constant 0 : index
    %137 = vector.load %arg1[%c3, %c0_68, %c0_69] : memref<4x32x3xbf16, #tpu.memory_space<vmem>>, vector<1x32x3xbf16>
    %138 = vector.shape_cast %137 : vector<1x32x3xbf16> to vector<32x3xbf16>
    %c0_70 = arith.constant 0 : index
    %c0_71 = arith.constant 0 : index
    %139 = vector.load %arg3[%c0_70, %c0_71] : memref<3x8xf32, #tpu.memory_space<vmem>>, vector<3x8xf32>
    %140 = arith.truncf %139 : vector<3x8xf32> to vector<3x8xbf16>
    %cst_72 = arith.constant dense<0.000000e+00> : vector<32x8xf32>
    %141 = tpu.matmul %138, %140, %cst_72 {dimension_numbers = #tpu.dot_dimension_numbers<[1], [0], [0], [1], [0, 0, 1, 1], [], []>} : vector<32x3xbf16>, vector<3x8xbf16>, vector<32x8xf32> -> vector<32x8xf32>
    %c0_73 = arith.constant 0 : index
    %c0_74 = arith.constant 0 : index
    %142 = vector.load %arg4[%c0_73, %c0_74] : memref<1x8xf32, #tpu.memory_space<vmem>>, vector<1x8xf32>
    %143 = vector.broadcast %142 : vector<1x8xf32> to vector<32x8xf32>
    %144 = arith.addf %141, %143 : vector<32x8xf32>
    %cst_75 = arith.constant 0.000000e+00 : f32
    %145 = vector.broadcast %cst_75 : f32 to vector<32x8xf32>
    %146 = arith.maximumf %144, %145 : vector<32x8xf32>
    %c0_76 = arith.constant 0 : index
    %c0_77 = arith.constant 0 : index
    %147 = vector.load %arg5[%c0_76, %c0_77] : memref<8x8xf32, #tpu.memory_space<vmem>>, vector<8x8xf32>
    %148 = arith.truncf %147 : vector<8x8xf32> to vector<8x8xbf16>
    %149 = arith.truncf %146 : vector<32x8xf32> to vector<32x8xbf16>
    %cst_78 = arith.constant dense<0.000000e+00> : vector<32x8xf32>
    %150 = tpu.matmul %149, %148, %cst_78 {dimension_numbers = #tpu.dot_dimension_numbers<[1], [0], [0], [1], [0, 0, 1, 1], [], []>} : vector<32x8xbf16>, vector<8x8xbf16>, vector<32x8xf32> -> vector<32x8xf32>
    %c0_79 = arith.constant 0 : index
    %c0_80 = arith.constant 0 : index
    %151 = vector.load %arg6[%c0_79, %c0_80] : memref<1x8xf32, #tpu.memory_space<vmem>>, vector<1x8xf32>
    %152 = vector.broadcast %151 : vector<1x8xf32> to vector<32x8xf32>
    %153 = arith.addf %150, %152 : vector<32x8xf32>
    %cst_81 = arith.constant 0.000000e+00 : f32
    %154 = vector.broadcast %cst_81 : f32 to vector<32x8xf32>
    %155 = arith.maximumf %153, %154 : vector<32x8xf32>
    %c0_82 = arith.constant 0 : index
    %c0_83 = arith.constant 0 : index
    %156 = vector.load %arg7[%c0_82, %c0_83] : memref<8x4xf32, #tpu.memory_space<vmem>>, vector<8x4xf32>
    %157 = arith.truncf %156 : vector<8x4xf32> to vector<8x4xbf16>
    %158 = arith.truncf %155 : vector<32x8xf32> to vector<32x8xbf16>
    %cst_84 = arith.constant dense<0.000000e+00> : vector<32x4xf32>
    %159 = tpu.matmul %158, %157, %cst_84 {dimension_numbers = #tpu.dot_dimension_numbers<[1], [0], [0], [1], [0, 0, 1, 1], [], []>} : vector<32x8xbf16>, vector<8x4xbf16>, vector<32x4xf32> -> vector<32x4xf32>
    %c0_85 = arith.constant 0 : index
    %c0_86 = arith.constant 0 : index
    %160 = vector.load %arg8[%c0_85, %c0_86] : memref<1x4xf32, #tpu.memory_space<vmem>>, vector<1x4xf32>
    %161 = vector.broadcast %160 : vector<1x4xf32> to vector<32x4xf32>
    %162 = arith.addf %159, %161 : vector<32x4xf32>
    %cst_87 = arith.constant 0.000000e+00 : f32
    %163 = vector.broadcast %cst_87 : f32 to vector<32x4xf32>
    %164 = arith.maximumf %162, %163 : vector<32x4xf32>
    %c3_88 = arith.constant 3 : index
    %c0_89 = arith.constant 0 : index
    %c0_90 = arith.constant 0 : index
    %165 = vector.load %arg2[%c3_88, %c0_89, %c0_90] : memref<4x32x6xbf16, #tpu.memory_space<vmem>>, vector<1x32x6xbf16>
    %166 = vector.shape_cast %165 : vector<1x32x6xbf16> to vector<32x6xbf16>
    %167 = arith.extf %166 : vector<32x6xbf16> to vector<32x6xf32>
    %168 = vector.extract_strided_slice %164 {offsets = [0, 0], sizes = [32, 1], strides = [1, 1]} : vector<32x4xf32> to vector<32x1xf32>
    %169 = vector.broadcast %168 : vector<32x1xf32> to vector<32x6xf32>
    %170 = arith.mulf %169, %167 : vector<32x6xf32>
    %171 = arith.addf %124, %170 : vector<32x6xf32>
    %172 = vector.extract_strided_slice %164 {offsets = [0, 1], sizes = [32, 1], strides = [1, 1]} : vector<32x4xf32> to vector<32x1xf32>
    %173 = vector.broadcast %172 : vector<32x1xf32> to vector<32x6xf32>
    %174 = arith.mulf %173, %167 : vector<32x6xf32>
    %175 = arith.addf %128, %174 : vector<32x6xf32>
    %176 = vector.extract_strided_slice %164 {offsets = [0, 2], sizes = [32, 1], strides = [1, 1]} : vector<32x4xf32> to vector<32x1xf32>
    %177 = vector.broadcast %176 : vector<32x1xf32> to vector<32x6xf32>
    %178 = arith.mulf %177, %167 : vector<32x6xf32>
    %179 = arith.addf %132, %178 : vector<32x6xf32>
    %180 = vector.extract_strided_slice %164 {offsets = [0, 3], sizes = [32, 1], strides = [1, 1]} : vector<32x4xf32> to vector<32x1xf32>
    %181 = vector.broadcast %180 : vector<32x1xf32> to vector<32x6xf32>
    %182 = arith.mulf %181, %167 : vector<32x6xf32>
    %183 = arith.addf %136, %182 : vector<32x6xf32>
    %184 = tpu.concatenate %171, %175, %179, %183 in 1 : vector<32x6xf32>, vector<32x6xf32>, vector<32x6xf32>, vector<32x6xf32> -> vector<32x24xf32>
    %c0_91 = arith.constant 0 : index
    %c0_92 = arith.constant 0 : index
    %185 = vector.load %arg9[%c0_91, %c0_92] : memref<24x16xf32, #tpu.memory_space<vmem>>, vector<24x16xf32>
    %186 = arith.truncf %185 : vector<24x16xf32> to vector<24x16xbf16>
    %187 = arith.truncf %184 : vector<32x24xf32> to vector<32x24xbf16>
    %cst_93 = arith.constant dense<0.000000e+00> : vector<32x16xf32>
    %188 = tpu.matmul %187, %186, %cst_93 {dimension_numbers = #tpu.dot_dimension_numbers<[1], [0], [0], [1], [0, 0, 1, 1], [], []>} : vector<32x24xbf16>, vector<24x16xbf16>, vector<32x16xf32> -> vector<32x16xf32>
    %c0_94 = arith.constant 0 : index
    %c0_95 = arith.constant 0 : index
    %189 = vector.load %arg10[%c0_94, %c0_95] : memref<1x16xf32, #tpu.memory_space<vmem>>, vector<1x16xf32>
    %190 = vector.broadcast %189 : vector<1x16xf32> to vector<32x16xf32>
    %191 = arith.addf %188, %190 : vector<32x16xf32>
    %cst_96 = arith.constant 0.000000e+00 : f32
    %192 = vector.broadcast %cst_96 : f32 to vector<32x16xf32>
    %193 = arith.maximumf %191, %192 : vector<32x16xf32>
    %c0_97 = arith.constant 0 : index
    %c0_98 = arith.constant 0 : index
    %194 = vector.load %arg11[%c0_97, %c0_98] : memref<16x8xf32, #tpu.memory_space<vmem>>, vector<16x8xf32>
    %195 = arith.truncf %194 : vector<16x8xf32> to vector<16x8xbf16>
    %196 = arith.truncf %193 : vector<32x16xf32> to vector<32x16xbf16>
    %cst_99 = arith.constant dense<0.000000e+00> : vector<32x8xf32>
    %197 = tpu.matmul %196, %195, %cst_99 {dimension_numbers = #tpu.dot_dimension_numbers<[1], [0], [0], [1], [0, 0, 1, 1], [], []>} : vector<32x16xbf16>, vector<16x8xbf16>, vector<32x8xf32> -> vector<32x8xf32>
    %c0_100 = arith.constant 0 : index
    %c0_101 = arith.constant 0 : index
    %198 = vector.load %arg12[%c0_100, %c0_101] : memref<1x8xf32, #tpu.memory_space<vmem>>, vector<1x8xf32>
    %199 = vector.broadcast %198 : vector<1x8xf32> to vector<32x8xf32>
    %200 = arith.addf %197, %199 : vector<32x8xf32>
    %c0_102 = arith.constant 0 : index
    %c0_103 = arith.constant 0 : index
    %201 = vector.load %arg13[%c0_102, %c0_103] : memref<32x8xf32, #tpu.memory_space<vmem>>, vector<32x8xf32>
    tpu.vector_store %arg13[%c0_102, %c0_103], %200 {strides = array<i32>} : memref<32x8xf32, #tpu.memory_space<vmem>>, vector<32x8xf32>,
    return
  }
  func.func @transform_0(%arg0: i32) -> (i32, i32, i32) {
    %c0_i32 = arith.constant 0 : i32
    %c0_i32_0 = arith.constant 0 : i32
    %c0_i32_1 = arith.constant 0 : i32
    return %c0_i32, %arg0, %c0_i32_0 : i32, i32, i32
  }
  func.func @transform_1(%arg0: i32) -> (i32, i32, i32) {
    %c0_i32 = arith.constant 0 : i32
    %c0_i32_0 = arith.constant 0 : i32
    %c0_i32_1 = arith.constant 0 : i32
    return %c0_i32, %arg0, %c0_i32_0 : i32, i32, i32
  }
  func.func @transform_2(%arg0: i32) -> (i32, i32) {
    %c0_i32 = arith.constant 0 : i32
    %c0_i32_0 = arith.constant 0 : i32
    %c0_i32_1 = arith.constant 0 : i32
    return %c0_i32, %c0_i32_0 : i32, i32
  }
  func.func @transform_3(%arg0: i32) -> (i32, i32) {
    %c0_i32 = arith.constant 0 : i32
    %c0_i32_0 = arith.constant 0 : i32
    %c0_i32_1 = arith.constant 0 : i32
    return %c0_i32, %c0_i32_0 : i32, i32
  }
  func.func @transform_4(%arg0: i32) -> (i32, i32) {
    %c0_i32 = arith.constant 0 : i32
    %c0_i32_0 = arith.constant 0 : i32
    %c0_i32_1 = arith.constant 0 : i32
    return %c0_i32, %c0_i32_0 : i32, i32
  }
  func.func @transform_5(%arg0: i32) -> (i32, i32) {
    %c0_i32 = arith.constant 0 : i32
    %c0_i32_0 = arith.constant 0 : i32
    %c0_i32_1 = arith.constant 0 : i32
    return %c0_i32, %c0_i32_0 : i32, i32
  }
  func.func @transform_6(%arg0: i32) -> (i32, i32) {
    %c0_i32 = arith.constant 0 : i32
    %c0_i32_0 = arith.constant 0 : i32
    %c0_i32_1 = arith.constant 0 : i32
    return %c0_i32, %c0_i32_0 : i32, i32
  }
  func.func @transform_7(%arg0: i32) -> (i32, i32) {
    %c0_i32 = arith.constant 0 : i32
    %c0_i32_0 = arith.constant 0 : i32
    %c0_i32_1 = arith.constant 0 : i32
    return %c0_i32, %c0_i32_0 : i32, i32
  }
  func.func @transform_8(%arg0: i32) -> (i32, i32) {
    %c0_i32 = arith.constant 0 : i32
    %c0_i32_0 = arith.constant 0 : i32
    %c0_i32_1 = arith.constant 0 : i32
    return %c0_i32, %c0_i32_0 : i32, i32
  }
  func.func @transform_9(%arg0: i32) -> (i32, i32) {
    %c0_i32 = arith.constant 0 : i32
    %c0_i32_0 = arith.constant 0 : i32
    %c0_i32_1 = arith.constant 0 : i32
    return %c0_i32, %c0_i32_0 : i32, i32
  }
  func.func @transform_10(%arg0: i32) -> (i32, i32) {
    %c0_i32 = arith.constant 0 : i32
    %c0_i32_0 = arith.constant 0 : i32
    %c0_i32_1 = arith.constant 0 : i32
    return %c0_i32, %c0_i32_0 : i32, i32
  }
  func.func @transform_11(%arg0: i32) -> (i32, i32) {
    %c0_i32 = arith.constant 0 : i32
    %c0_i32_0 = arith.constant 0 : i32
    %c0_i32_1 = arith.constant 0 : i32
    return %c0_i32, %c0_i32_0 : i32, i32
  }
  func.func @transform_12(%arg0: i32) -> (i32, i32) {
    %c0_i32 = arith.constant 0 : i32
    %c0_i32_0 = arith.constant 0 : i32
    return %arg0, %c0_i32 : i32, i32
  }
}

</mosaic_0001>

<bundles_post_ra>
// kernel: tpu_custom_call.1
= control target key start
LH: loop header
LB: loop body
LE: loop exit
PB: predicated region body
PF: predicated region fallthrough
CT: control target
= control target key end

     0   :  { %vm69_vm0 = vcmask 1040384   ;;  %vm70_vm1 = vcmask 1041408   ;;  %v1295_v1 = vmov 65535   ;;  %vm62_vm2 = vcmask 23552   ;;  %s1300_s15 = smov 12   ;;  %s1302_s18 = smov 18   ;;  %s1848_s2 = inlined_call_operand.vmem [shape: f32[3,8], index: 2, kind: input, shape index: {}]   ;;  %s1849_s3 = inlined_call_operand.vmem [shape: f32[1,8], index: 3, kind: input, shape index: {}]   ;;  %s1850_s0 = inlined_call_operand.vmem [shape: bf16[4,32,3], index: 0, kind: input, shape index: {}]   ;;  %s1851_s5 = inlined_call_operand.vmem [shape: f32[1,8], index: 5, kind: input, shape index: {}]   ;;  %s1852_s4 = inlined_call_operand.vmem [shape: f32[8,8], index: 4, kind: input, shape index: {}]   ;;  %s1853_s7 = inlined_call_operand.vmem [shape: f32[1,4], index: 7, kind: input, shape index: {}]   ;;  %s1854_s6 = inlined_call_operand.vmem [shape: f32[8,4], index: 6, kind: input, shape index: {}]   ;;  %s1855_s1 = inlined_call_operand.vmem [shape: bf16[4,32,6], index: 1, kind: input, shape index: {}]   ;;  %s1856_s9 = inlined_call_operand.vmem [shape: f32[1,16], index: 9, kind: input, shape index: {}]   ;;  %s1857_s8 = inlined_call_operand.vmem [shape: f32[24,16], index: 8, kind: input, shape index: {}]   ;;  %s1858_s10 = inlined_call_operand.vmem [shape: f32[16,8], index: 10, kind: input, shape index: {}]   ;;  %s1859_s11 = inlined_call_operand.vmem [shape: f32[1,8], index: 11, kind: input, shape index: {}]   ;;  %s1860_s12 = inlined_call_operand.vmem [shape: f32[32,8], index: 12, kind: output, shape index: {}]  }
   0x1   :  { %v46_v0 = vld [vmem:[%s1848_s2] sm:$0x7]  ;;  %v71_v2 = vsel %vm69_vm0, 4294967295, %v1295_v1  ;;  %v1153_v7 = vld [vmem:[%s1850_s0 + $0x8] sm:$0xff]  ;;  %vm114_vm3 = vcmask 1043456   ;;  %vm107_vm4 = vcmask 64512  }
   0x2   :  { %v47_v3 = vpack.c.bf16 %v46_v0, %v46_v0  ;;  %v72_v4 = vsel %vm70_vm1, %v71_v2, 0  ;;  %v1152_v6 = vld [vmem:[%s1850_s0] sm:$0xff]  ;;  %v1154_v26 = vld [vmem:[%s1850_s0 + $0x10] sm:$0xff]  ;;  %v1155_v27 = vld [vmem:[%s1850_s0 + $0x18] sm:$0xff]  ;;  %v1296_v62 = vmov 2   ;;  %v1297_v63 = vmov 1  }
   0x3   :  { %v99_v8 = vld [vmem:[%s1852_s4] sm:$0xff]  ;;  %v1157_v61 = vld [vmem:[%s1850_s0 + $0x28] sm:$0xff]  ;;  %1211 = vset.pattern.permute.xlu1 %v1296_v62  ;;  %1210 = vset.pattern.permute.xlu2 %v1297_v63  ;;  %v1298_v0 = vmov 0   ;;  %vm966_vm5 = vcmask 48128   ;;  %vm971_vm6 = vcmask 97280   ;;  %vm976_vm7 = vcmask 146432  }
   0x4   :  { %v74_v5 = vand.u32 %v72_v4, %v47_v3  ;;  %v100_v9 = vpack.c.bf16 %v99_v8, %v99_v8  ;;  %v1386_v12 = vld [vmem:[%s1849_s3] ss:$0 sm:$0xff]  ;;  %1209 = vset.pattern.permute.xlu0 %v1298_v0  ;;  %v1299_v8 = vmov 3   ;;  %vm992_vm8 = vcmask 195584  }
   0x5   :  { %v141_v28 = vld [vmem:[%s1854_s6] sm:$0xff]  ;;  %vm1034_vm9 = vcmask 130048  }
   0x6   :  { %83 = vmatpush.bf16.msra.mxu0 %v74_v5  ;;  %1199 = vmatpush.bf16.msra.mxu2 %v74_v5  ;;  %v116_v10 = vsel %vm114_vm3, %v100_v9, 0  ;;  %v142_v29 = vpack.c.bf16 %v141_v28, %v141_v28  ;;  %v1409_v32 = vld [vmem:[%s1851_s5] ss:$0 sm:$0xff] }
   0x7   :  { %125 = vmatpush.bf16.msra.mxu1 %v116_v10  ;;  %1200 = vmatpush.bf16.msra.mxu3 %v116_v10  ;;  %v1156_v53 = vld [vmem:[%s1850_s0 + $0x20] sm:$0xff] }
   0x8   :  { %v156_v30 = vsel %vm114_vm3, %v142_v29, 0  ;;  %v1437_v1 = vld [vmem:[%s1853_s7] ss:$0 sm:$0xff] }
   0x9   :  { %1076 = vmatmul.msk.bf16.vlgmr.msra.gmra.mxu0 %vm62_vm2, %v1152_v6  ;;  %1077 = vmatmul.msk.bf16.vlgmr.msra.gmra.mxu2 %vm62_vm2, %v1153_v7 }
   0xa   :  { %332 = vmatpush.bf16.msrb.mxu0 %v116_v10  ;;  %165 = vmatpush.bf16.msrb.mxu2 %v156_v30 }
   0xb   :  { %301 = vmatpush.bf16.msrb.mxu3 %v74_v5  ;;  %363 = vmatpush.bf16.msrb.mxu1 %v156_v30 }
   0xe   :  { %516 = vmatpush.bf16.msra.mxu2 %v74_v5  ;;  %578 = vmatpush.bf16.msra.mxu0 %v156_v30 }
  0x86   :  { %v85_v11 = vpop.f32.mrf.mxu0 }
  0x87   :  { %v86_v13 = vadd.f32 %v1386_v12, %v85_v11 }
  0x89   :  { %v95_v16 = vmax.f32 %v86_v13, 0.0 }
  0x8c   :  { %v90_v14 = vpop.f32.mrf.mxu2 }
  0x8d   :  { %v91_v19 = vadd.f32 %v1386_v12, %v90_v14 }
  0x8e   :  { %v87_v15 = vpop.f32.mrf.mxu0 }
  0x8f   :  { %v88_v17 = vadd.f32 %v1386_v12, %v87_v15  ;;  %v97_v23 = vmax.f32 %v91_v19, 0.0 }
  0x91   :  { %v96_v18 = vmax.f32 %v88_v17, 0.0 }
  0x93   :  { %v101_v20 = vpack.c.bf16 %v96_v18, %v95_v16 }
  0x94   :  { %v92_v21 = vpop.f32.mrf.mxu2 }
  0x95   :  { %v93_v22 = vadd.f32 %v1386_v12, %v92_v21  ;;  %1078 = vmatmul.msk.bf16.vlgmr.msra.gmra.mxu1 %vm107_vm4, %v101_v20 }
  0x96   :  { %731 = vmatpush.bf16.msra.mxu1 %v74_v5 }
  0x97   :  { %v98_v24 = vmax.f32 %v93_v22, 0.0 }
  0x99   :  { %v102_v25 = vpack.c.bf16 %v98_v24, %v97_v23 }
  0x9b   :  { %1079 = vmatmul.msk.bf16.vlgmr.msra.gmra.mxu3 %vm107_vm4, %v102_v25 }
  0x9c   :  { %547 = vmatpush.bf16.msra.mxu3 %v116_v10 }
  0xab   :  { %1094 = vmatmul.msk.bf16.vlgmr.msrb.gmra.mxu3 %vm62_vm2, %v1154_v26 }
  0xac   :  { %793 = vmatpush.bf16.msrb.mxu3 %v156_v30 }
  0xbb   :  { %1095 = vmatmul.msk.bf16.gmra.mxu3 %vm62_vm2, %v1155_v27 }
 0x112   :  { %v127_v31 = vpop.f32.mrf.mxu1 }
 0x113   :  { %v128_v33 = vadd.f32 %v1409_v32, %v127_v31 }
 0x115   :  { %v137_v35 = vmax.f32 %v128_v33, 0.0 }
 0x11a   :  { %v129_v34 = vpop.f32.mrf.mxu1 }
 0x11b   :  { %v130_v36 = vadd.f32 %v1409_v32, %v129_v34 }
 0x11d   :  { %v138_v37 = vmax.f32 %v130_v36, 0.0 }
 0x11e   :  { %v132_v38 = vpop.f32.mrf.mxu3 }
 0x11f   :  { %v143_v39 = vpack.c.bf16 %v138_v37, %v137_v35  ;;  %v133_v42 = vadd.f32 %v1409_v32, %v132_v38 }
 0x121   :  { %1080 = vmatmul.msk.bf16.vlgmr.msrb.gmra.mxu2 %vm107_vm4, %v143_v39  ;;  %v139_v44 = vmax.f32 %v133_v42, 0.0 }
 0x122   :  { %762 = vmatpush.bf16.msrb.mxu2 %v116_v10 }
 0x126   :  { %v134_v40 = vpop.f32.mrf.mxu3 }
 0x127   :  { %v135_v41 = vadd.f32 %v1409_v32, %v134_v40 }
 0x129   :  { %v140_v43 = vmax.f32 %v135_v41, 0.0 }
 0x12b   :  { %v144_v46 = vpack.c.bf16 %v140_v43, %v139_v44 }
 0x12e   :  { %v303_v45 = vpop.f32.mrf.mxu3 }
 0x12f   :  { %v304_v47 = vadd.f32 %v1386_v12, %v303_v45  ;;  %v1158_v45 = vld [vmem:[%s1850_s0 + $0x30] sm:$0xff] }
 0x131   :  { %1081 = vmatmul.msk.bf16.gmra.mxu2 %vm107_vm4, %v144_v46  ;;  %v313_v50 = vmax.f32 %v304_v47, 0.0  ;;  %v1159_v46 = vld [vmem:[%s1850_s0 + $0x38] sm:$0xff]  ;;  %v1161_v47 = vld [vmem:[%s1855_s1] sm:$0xff]  }
 0x136   :  { %v305_v48 = vpop.f32.mrf.mxu3 }
 0x137   :  { %v306_v49 = vadd.f32 %v1386_v12, %v305_v48  ;;  %v1479_v48 = vunpack.c.l.bf16 %v1161_v47 }
 0x139   :  { %v314_v51 = vmax.f32 %v306_v49, 0.0 }
 0x13b   :  { %v317_v52 = vpack.c.bf16 %v314_v51, %v313_v50 }
 0x13d   :  { %1096 = vmatmul.msk.bf16.vlgmr.msrb.gmra.mxu0 %vm107_vm4, %v317_v52  ;;  %v1486_v52 = vunpack.c.h.bf16 %v1161_v47 }
 0x13e   :  { %v308_v54 = vpop.f32.mrf.mxu3 }
 0x13f   :  { %v309_v55 = vadd.f32 %v1386_v12, %v308_v54 }
 0x141   :  { %1116 = vmatmul.msk.bf16.vlgmr.msra.gmra.mxu2 %vm62_vm2, %v1156_v53  ;;  %v315_v58 = vmax.f32 %v309_v55, 0.0 }
 0x146   :  { %v310_v56 = vpop.f32.mrf.mxu3 }
 0x147   :  { %v311_v57 = vadd.f32 %v1386_v12, %v310_v56  ;;  %v1192_v56 = vld [vmem:[%s1855_s1 + $0x8] sm:$0xff]  }
 0x149   :  { %v316_v59 = vmax.f32 %v311_v57, 0.0  ;;  %v1496_v57 = vunpack.c.l.bf16 %v1192_v56 }
 0x14b   :  { %v318_v60 = vpack.c.bf16 %v316_v59, %v315_v58 }
 0x14d   :  { %1097 = vmatmul.msk.bf16.gmra.mxu0 %vm107_vm4, %v318_v60  ;;  %v1501_v60 = vunpack.c.h.bf16 %v1192_v56 }
 0x151   :  { %1117 = vmatmul.msk.bf16.gmra.mxu2 %vm62_vm2, %v1157_v61 }
 0x1a4   :  { %v167_v2 = vpop.f32.mrf.mxu2 }
 0x1a5   :  { %v168_v3 = vadd.f32 %v1437_v1, %v167_v2 }
 0x1a7   :  { %v177_v4 = vmax.f32 %v168_v3, 0.0 }
 0x1a9   :  { %234 = vperm.xlu1 %1211, %v177_v4   ;;  %214 = vperm.xlu2 %1210, %v177_v4  }
 0x1aa   :  { %191 = vperm.xlu0 %1209, %v177_v4  }
 0x1ac   :  { %v169_v5 = vpop.f32.mrf.mxu2 }
 0x1ad   :  { %v170_v6 = vadd.f32 %v1437_v1, %v169_v5 }
 0x1af   :  { %v178_v7 = vmax.f32 %v170_v6, 0.0 }
 0x1b1   :  { %1215 = vset.pattern.permute.xlu1 %v1299_v8  ;;  %1212 = vset.pattern.permute.xlu2 %v1299_v8 }
 0x1b2   :  { %196 = vperm.xlu0 %1209, %v178_v7   ;;  %258 = vperm.xlu1 %1215, %v178_v7  }
 0x1b3   :  { %254 = vperm.xlu2 %1212, %v177_v4  }
 0x1b4   :  { %v172_v9 = vpop.f32.mrf.mxu2 }
 0x1b5   :  { %v173_v10 = vadd.f32 %v1437_v1, %v172_v9 }
 0x1b7   :  { %v179_v11 = vmax.f32 %v173_v10, 0.0 }
 0x1ba   :  { %1217 = vset.pattern.permute.xlu0 %v1297_v63  ;;  %v334_v13 = vpop.f32.mrf.mxu0  ;;  %1216 = vset.pattern.permute.xlu1 %v1298_v0 }
 0x1bb   :  { %1213 = vset.pattern.permute.xlu2 %v1297_v63  ;;  %222 = vperm.xlu0 %1217, %v179_v11   ;;  %v335_v16 = vadd.f32 %v1409_v32, %v334_v13 }
 0x1bc   :  { %201 = vperm.xlu1 %1216, %v179_v11   ;;  %218 = vperm.xlu2 %1213, %v178_v7   ;;  %v174_v14 = vpop.f32.mrf.mxu2 }
 0x1bd   :  { %v175_v15 = vadd.f32 %v1437_v1, %v174_v14  ;;  %v344_v21 = vmax.f32 %v335_v16, 0.0 }
 0x1bf   :  { %v180_v17 = vmax.f32 %v175_v15, 0.0 }
 0x1c2   :  { %v336_v18 = vpop.f32.mrf.mxu0 }
 0x1c3   :  { %v337_v19 = vadd.f32 %v1409_v32, %v336_v18  ;;  %1218 = vset.pattern.permute.xlu0 %v1296_v62 }
 0x1c4   :  { %206 = vperm.xlu1 %1216, %v180_v17   ;;  %1214 = vset.pattern.permute.xlu2 %v1296_v62  ;;  %v518_v20 = vpop.f32.mrf.mxu2 }
 0x1c5   :  { %v345_v22 = vmax.f32 %v337_v19, 0.0  ;;  %242 = vperm.xlu0 %1218, %v179_v11   ;;  %238 = vperm.xlu2 %1214, %v178_v7   ;;  %v519_v24 = vadd.f32 %v1386_v12, %v518_v20 }
 0x1c7   :  { %v348_v23 = vpack.c.bf16 %v345_v22, %v344_v21  ;;  %v528_v27 = vmax.f32 %v519_v24, 0.0 }
 0x1c9   :  { %1098 = vmatmul.msk.bf16.vlgmr.msrb.gmra.mxu1 %vm107_vm4, %v348_v23 }
 0x1ca   :  { %v339_v25 = vpop.f32.mrf.mxu0 }
 0x1cb   :  { %v340_v30 = vadd.f32 %v1409_v32, %v339_v25 }
 0x1cc   :  { %1221 = vset.pattern.permute.xlu1 %v1296_v62  ;;  %v520_v26 = vpop.f32.mrf.mxu2 }
 0x1cd   :  { %1220 = vset.pattern.permute.xlu0 %v1297_v63  ;;  %v521_v28 = vadd.f32 %v1386_v12, %v520_v26  ;;  %246 = vperm.xlu1 %1221, %v180_v17   ;;  %v346_v36 = vmax.f32 %v340_v30, 0.0 }
 0x1ce   :  { %1219 = vset.pattern.permute.xlu2 %v1299_v8  ;;  %226 = vperm.xlu0 %1220, %v180_v17  }
 0x1cf   :  { %v529_v29 = vmax.f32 %v521_v28, 0.0  ;;  %262 = vperm.xlu2 %1219, %v179_v11  }
 0x1d1   :  { %v532_v31 = vpack.c.bf16 %v529_v29, %v528_v27 }
 0x1d2   :  { %v341_v33 = vpop.f32.mrf.mxu0 }
 0x1d3   :  { %v342_v34 = vadd.f32 %v1409_v32, %v341_v33  ;;  %1118 = vmatmul.msk.bf16.vlgmr.msra.gmra.mxu3 %vm107_vm4, %v532_v31 }
 0x1d4   :  { %v523_v35 = vpop.f32.mrf.mxu2 }
 0x1d5   :  { %v347_v37 = vmax.f32 %v342_v34, 0.0  ;;  %1223 = vset.pattern.permute.xlu1 %v1297_v63  ;;  %v524_v39 = vadd.f32 %v1386_v12, %v523_v35 }
 0x1d6   :  { %1222 = vset.pattern.permute.xlu0 %v1299_v8 }
 0x1d7   :  { %v349_v38 = vpack.c.bf16 %v347_v37, %v346_v36  ;;  %266 = vperm.xlu0 %1222, %v180_v17   ;;  %v530_v41 = vmax.f32 %v524_v39, 0.0 }
 0x1d9   :  { %1099 = vmatmul.msk.bf16.gmra.mxu1 %vm107_vm4, %v349_v38 }
 0x1dc   :  { %v525_v40 = vpop.f32.mrf.mxu2 }
 0x1dd   :  { %v526_v42 = vadd.f32 %v1386_v12, %v525_v40 }
 0x1df   :  { %v531_v43 = vmax.f32 %v526_v42, 0.0  ;;  %1224 = vset.pattern.permute.xlu0 %v1296_v62 }
 0x1e1   :  { %v533_v44 = vpack.c.bf16 %v531_v43, %v530_v41 }
 0x1e3   :  { %1119 = vmatmul.msk.bf16.gmra.mxu3 %vm107_vm4, %v533_v44 }
 0x1e9   :  { %1138 = vmatmul.msk.bf16.vlgmr.msra.gmra.mxu1 %vm62_vm2, %v1158_v45 }
 0x1f9   :  { %1139 = vmatmul.msk.bf16.gmra.mxu1 %vm62_vm2, %v1159_v46 }
 0x203   :  { %v215_v39 = vpop.permute.xlu2 %214 }
 0x20d   :  { %v255_v43 = vpop.permute.xlu2 %254 }
 0x21b   :  { %v1481_v49 = vpop.permute.xlu1 %234 }
 0x21c   :  { %v192_v50 = vpop.permute.xlu0 %191 }
 0x21d   :  { %v1484_v51 = vmul.f32 %v1479_v48, %v192_v50  ;;  %v219_v50 = vpop.permute.xlu2 %218 }
 0x224   :  { %v197_v53 = vpop.permute.xlu0 %196  ;;  %v1488_v54 = vpop.permute.xlu1 %258 }
 0x225   :  { %v1491_v55 = vmul.f32 %v1486_v52, %v197_v53  ;;  %v239_v53 = vpop.permute.xlu2 %238 }
 0x22d   :  { %v223_v56 = vpop.permute.xlu0 %222 }
 0x22e   :  { %v202_v58 = vpop.permute.xlu1 %201 }
 0x22f   :  { %v1499_v59 = vmul.f32 %v1496_v57, %v202_v58  ;;  %v1549_v58 = vpop.permute.xlu2 %262 }
 0x236   :  { %v207_v61 = vpop.permute.xlu1 %206 }
 0x237   :  { %v1504_v2 = vmul.f32 %v1501_v60, %v207_v61  ;;  %v1193_v61 = vld [vmem:[%s1855_s1 + $0x10] sm:$0xff]  }
 0x246   :  { %v365_v3 = vpop.f32.mrf.mxu1 }
 0x247   :  { %v366_v4 = vadd.f32 %v1437_v1, %v365_v3  ;;  %v243_v3 = vpop.permute.xlu0 %242 }
 0x249   :  { %v375_v5 = vmax.f32 %v366_v4, 0.0  ;;  %v1554_v4 = vunpack.c.l.bf16 %v1193_v61 }
 0x24b   :  { %417 = vperm.xlu1 %1223, %v375_v5   ;;  %465 = vperm.xlu2 %1219, %v375_v5  }
 0x24c   :  { %441 = vperm.xlu0 %1224, %v375_v5  }
 0x24e   :  { %v367_v6 = vpop.f32.mrf.mxu1 }
 0x24f   :  { %v368_v7 = vadd.f32 %v1437_v1, %v367_v6 }
 0x251   :  { %v1508_v9 = vmax.f32 %v368_v7, 0.0 }
 0x253   :  { %1227 = vset.pattern.permute.xlu1 %v1296_v62  ;;  %1226 = vset.pattern.permute.xlu2 %v1297_v63 }
 0x254   :  { %1225 = vset.pattern.permute.xlu0 %v1298_v0  ;;  %445 = vperm.xlu1 %1227, %v1508_v9  }
 0x255   :  { %421 = vperm.xlu2 %1226, %v1508_v9   ;;  %390 = vperm.xlu0 %1225, %v375_v5  }
 0x256   :  { %v370_v10 = vpop.f32.mrf.mxu1  ;;  %v549_v11 = vpop.f32.mrf.mxu3 }
 0x257   :  { %v371_v13 = vadd.f32 %v1437_v1, %v370_v10  ;;  %v550_v14 = vadd.f32 %v1409_v32, %v549_v11  ;;  %v227_v10 = vpop.permute.xlu0 %226  ;;  %v1560_v11 = vunpack.c.h.bf16 %v1193_v61 }
 0x259   :  { %v1517_v15 = vmax.f32 %v371_v13, 0.0  ;;  %v559_v18 = vmax.f32 %v550_v14, 0.0  ;;  %v230_v14 = vmul.f32 %v1486_v52, %v219_v50 }
 0x25c   :  { %1229 = vset.pattern.permute.xlu1 %v1297_v63 }
 0x25d   :  { %1230 = vset.pattern.permute.xlu2 %v1296_v62  ;;  %1228 = vset.pattern.permute.xlu0 %v1299_v8 }
 0x25e   :  { %425 = vperm.xlu1 %1229, %v1517_v15   ;;  %449 = vperm.xlu2 %1230, %v1517_v15   ;;  %v372_v16 = vpop.f32.mrf.mxu1  ;;  %v551_v17 = vpop.f32.mrf.mxu3 }
 0x25f   :  { %469 = vperm.xlu0 %1228, %v1508_v9   ;;  %v552_v19 = vadd.f32 %v1409_v32, %v551_v17  ;;  %v373_v20 = vadd.f32 %v1437_v1, %v372_v16 }
 0x261   :  { %v560_v21 = vmax.f32 %v552_v19, 0.0  ;;  %v1527_v23 = vmax.f32 %v373_v20, 0.0  ;;  %v1569_v19 = vpop.permute.xlu1 %246 }
 0x263   :  { %v563_v22 = vpack.c.bf16 %v560_v21, %v559_v18  ;;  %v1194_v18 = vld [vmem:[%s1855_s1 + $0x18] sm:$0xff]   ;;  %v1573_v21 = vpop.permute.xlu0 %266 }
 0x264   :  { %v1571_v20 = vunpack.c.l.bf16 %v1194_v18 }
 0x265   :  { %1120 = vmatmul.msk.bf16.vlgmr.msra.gmra.mxu0 %vm107_vm4, %v563_v22 }
 0x266   :  { %1231 = vset.pattern.permute.xlu1 %v1299_v8  ;;  %1232 = vset.pattern.permute.xlu2 %v1297_v63  ;;  %v554_v24 = vpop.f32.mrf.mxu3  ;;  %v733_v25 = vpop.f32.mrf.mxu1 }
 0x267   :  { %473 = vperm.xlu1 %1231, %v1517_v15   ;;  %429 = vperm.xlu2 %1232, %v1527_v23   ;;  %v555_v26 = vadd.f32 %v1409_v32, %v554_v24  ;;  %v734_v27 = vadd.f32 %v1386_v12, %v733_v25  ;;  %v251_v24 = vmul.f32 %v1496_v57, %v243_v3 }
 0x269   :  { %v561_v30 = vmax.f32 %v555_v26, 0.0  ;;  %v743_v34 = vmax.f32 %v734_v27, 0.0 }
 0x26e   :  { %v556_v28 = vpop.f32.mrf.mxu3  ;;  %v735_v29 = vpop.f32.mrf.mxu1 }
 0x26f   :  { %v557_v31 = vadd.f32 %v1409_v32, %v556_v28  ;;  %v736_v33 = vadd.f32 %v1386_v12, %v735_v29  ;;  %1233 = vset.pattern.permute.xlu1 %v1296_v62  ;;  %1234 = vset.pattern.permute.xlu2 %v1299_v8  ;;  %v229_v28 = vmul.f32 %v1479_v48, %v215_v39 }
 0x270   :  { %453 = vperm.xlu1 %1233, %v1527_v23   ;;  %477 = vperm.xlu2 %1234, %v1527_v23  }
 0x271   :  { %v562_v35 = vmax.f32 %v557_v31, 0.0  ;;  %v744_v36 = vmax.f32 %v736_v33, 0.0  ;;  %v1583_v31 = vunpack.c.h.bf16 %v1194_v18 }
 0x273   :  { %v564_v37 = vpack.c.bf16 %v562_v35, %v561_v30  ;;  %v747_v38 = vpack.c.bf16 %v744_v36, %v743_v34  ;;  %v232_v35 = vmul.f32 %v1501_v60, %v227_v10 }
 0x275   :  { %1121 = vmatmul.msk.bf16.gmra.mxu0 %vm107_vm4, %v564_v37  ;;  %1140 = vmatmul.msk.bf16.vlgmr.msrb.gmra.mxu2 %vm107_vm4, %v747_v38 }
 0x276   :  { %v738_v40 = vpop.f32.mrf.mxu1 }
 0x277   :  { %v739_v41 = vadd.f32 %v1386_v12, %v738_v40  ;;  %v250_v40 = vmul.f32 %v1486_v52, %v239_v53 }
 0x278   :  { %1235 = vset.pattern.permute.xlu1 %v1297_v63  ;;  %1237 = vset.pattern.permute.xlu2 %v1297_v63 }
 0x279   :  { %v745_v45 = vmax.f32 %v739_v41, 0.0 }
 0x27e   :  { %v740_v42 = vpop.f32.mrf.mxu1 }
 0x27f   :  { %v741_v44 = vadd.f32 %v1386_v12, %v740_v42  ;;  %v269_v12 = vmul.f32 %v1479_v48, %v255_v43 }
 0x281   :  { %v746_v46 = vmax.f32 %v741_v44, 0.0 }
 0x283   :  { %v748_v47 = vpack.c.bf16 %v746_v46, %v745_v45  ;;  %v231_v46 = vmul.f32 %v1496_v57, %v223_v56 }
 0x285   :  { %1141 = vmatmul.msk.bf16.gmra.mxu2 %vm107_vm4, %v748_v47 }
 0x2a5   :  { %v466_v5 = vpop.permute.xlu2 %465 }
 0x2a6   :  { %v480_v6 = vmul.f32 %v1554_v4, %v466_v5 }
 0x2a8   :  { %v1558_v7 = vadd.f32 %v480_v6, %v269_v12 }
 0x2af   :  { %v422_v13 = vpop.permute.xlu2 %421 }
 0x2b0   :  { %v433_v16 = vmul.f32 %v1560_v11, %v422_v13 }
 0x2b2   :  { %v1564_v17 = vadd.f32 %v433_v16, %v230_v14 }
 0x2b8   :  { %v450_v22 = vpop.permute.xlu2 %449 }
 0x2b9   :  { %v458_v25 = vmul.f32 %v1571_v20, %v450_v22 }
 0x2bb   :  { %v1577_v26 = vadd.f32 %v458_v25, %v251_v24 }
 0x2bd   :  { %v418_v27 = vpop.permute.xlu1 %417 }
 0x2be   :  { %v432_v29 = vmul.f32 %v1554_v4, %v418_v27  ;;  %v1581_v30 = vpop.permute.xlu0 %441 }
 0x2c0   :  { %v1585_v33 = vadd.f32 %v432_v29, %v229_v28 }
 0x2c1   :  { %v430_v34 = vpop.permute.xlu2 %429 }
 0x2c2   :  { %v435_v36 = vmul.f32 %v1583_v31, %v430_v34 }
 0x2c4   :  { %v1589_v37 = vadd.f32 %v435_v36, %v232_v35 }
 0x2c6   :  { %v446_v38 = vpop.permute.xlu1 %445 }
 0x2c7   :  { %v457_v39 = vmul.f32 %v1560_v11, %v446_v38  ;;  %v391_v41 = vpop.permute.xlu0 %390 }
 0x2c8   :  { %v408_v42 = vmul.f32 %v1554_v4, %v391_v41 }
 0x2c9   :  { %v1594_v43 = vadd.f32 %v457_v39, %v250_v40 }
 0x2ca   :  { %v1597_v44 = vadd.f32 %v408_v42, %v1484_v51 }
 0x2d0   :  { %v426_v45 = vpop.permute.xlu1 %425 }
 0x2d1   :  { %v434_v47 = vmul.f32 %v1571_v20, %v426_v45 }
 0x2d3   :  { %v1601_v50 = vadd.f32 %v434_v47, %v231_v46 }
 0x2e2   :  { %v580_v61 = vpop.f32.mrf.mxu0 }
 0x2e3   :  { %v581_v53 = vadd.f32 %v1437_v1, %v580_v61 }
 0x2e5   :  { %v1604_v3 = vmax.f32 %v581_v53, 0.0 }
 0x2e7   :  { %632 = vperm.xlu1 %1235, %v1604_v3   ;;  %680 = vperm.xlu0 %1228, %v1604_v3  }
 0x2ea   :  { %v582_v5 = vpop.f32.mrf.mxu0 }
 0x2eb   :  { %v583_v51 = vadd.f32 %v1437_v1, %v582_v5 }
 0x2ed   :  { %v1609_v12 = vmax.f32 %v583_v51, 0.0 }
 0x2ef   :  { %1236 = vset.pattern.permute.xlu1 %v1296_v62  ;;  %636 = vperm.xlu2 %1237, %v1609_v12  }
 0x2f0   :  { %656 = vperm.xlu1 %1236, %v1604_v3   ;;  %1241 = vset.pattern.permute.xlu0 %v1296_v62 }
 0x2f2   :  { %v585_v56 = vpop.f32.mrf.mxu0 }
 0x2f3   :  { %v586_v6 = vadd.f32 %v1437_v1, %v585_v56 }
 0x2f5   :  { %v1616_v10 = vmax.f32 %v586_v6, 0.0 }
 0x2f7   :  { %1238 = vset.pattern.permute.xlu2 %v1296_v62  ;;  %664 = vperm.xlu0 %1241, %v1616_v10  }
 0x2f8   :  { %v764_v13 = vpop.f32.mrf.mxu2  ;;  %1239 = vset.pattern.permute.xlu1 %v1299_v8  ;;  %660 = vperm.xlu2 %1238, %v1609_v12  }
 0x2f9   :  { %684 = vperm.xlu1 %1239, %v1609_v12   ;;  %v765_v14 = vadd.f32 %v1409_v32, %v764_v13 }
 0x2fa   :  { %v587_v16 = vpop.f32.mrf.mxu0 }
 0x2fb   :  { %v588_v24 = vadd.f32 %v1437_v1, %v587_v16  ;;  %v774_v25 = vmax.f32 %v765_v14, 0.0 }
 0x2fd   :  { %v1631_v29 = vmax.f32 %v588_v24, 0.0 }
 0x2ff   :  { %1248 = vset.pattern.permute.xlu0 %v1297_v63 }
 0x300   :  { %v766_v18 = vpop.f32.mrf.mxu2  ;;  %1242 = vset.pattern.permute.xlu2 %v1299_v8 }
 0x301   :  { %v767_v22 = vadd.f32 %v1409_v32, %v766_v18  ;;  %1240 = vset.pattern.permute.xlu1 %v1297_v63  ;;  %688 = vperm.xlu2 %1242, %v1616_v10  }
 0x302   :  { %640 = vperm.xlu1 %1240, %v1616_v10  }
 0x303   :  { %v775_v27 = vmax.f32 %v767_v22, 0.0 }
 0x305   :  { %v778_v28 = vpack.c.bf16 %v775_v27, %v774_v25 }
 0x307   :  { %1142 = vmatmul.msk.bf16.vlgmr.msrb.gmra.mxu3 %vm107_vm4, %v778_v28 }
 0x308   :  { %v769_v34 = vpop.f32.mrf.mxu2 }
 0x309   :  { %1243 = vset.pattern.permute.xlu2 %v1297_v63  ;;  %v770_v35 = vadd.f32 %v1409_v32, %v769_v34 }
 0x30a   :  { %1244 = vset.pattern.permute.xlu1 %v1296_v62  ;;  %644 = vperm.xlu2 %1243, %v1631_v29  }
 0x30b   :  { %668 = vperm.xlu1 %1244, %v1631_v29   ;;  %v776_v40 = vmax.f32 %v770_v35, 0.0  ;;  %v456_v35 = vmul.f32 %v1554_v4, %v1581_v30 }
 0x310   :  { %v771_v36 = vpop.f32.mrf.mxu2 }
 0x311   :  { %v772_v38 = vadd.f32 %v1409_v32, %v771_v36 }
 0x313   :  { %v777_v39 = vmax.f32 %v772_v38, 0.0  ;;  %1245 = vset.pattern.permute.xlu1 %v1299_v8 }
 0x314   :  { %692 = vperm.xlu1 %1245, %v1631_v29  }
 0x315   :  { %v779_v41 = vpack.c.bf16 %v777_v39, %v776_v40 }
 0x317   :  { %1143 = vmatmul.msk.bf16.gmra.mxu3 %vm107_vm4, %v779_v41  ;;  %v249_v41 = vmul.f32 %v1479_v48, %v1481_v49 }
 0x31c   :  { %1246 = vset.pattern.permute.xlu1 %v1296_v62 }
 0x38a   :  { %v795_v42 = vpop.f32.mrf.mxu3 }
 0x38b   :  { %v796_v45 = vadd.f32 %v1437_v1, %v795_v42 }
 0x38d   :  { %v805_v46 = vmax.f32 %v796_v45, 0.0 }
 0x38f   :  { %871 = vperm.xlu1 %1246, %v805_v46   ;;  %847 = vperm.xlu2 %1243, %v805_v46  }
 0x392   :  { %v797_v47 = vpop.f32.mrf.mxu3 }
 0x393   :  { %v798_v32 = vadd.f32 %v1437_v1, %v797_v47 }
 0x395   :  { %v806_v61 = vmax.f32 %v798_v32, 0.0 }
 0x397   :  { %1247 = vset.pattern.permute.xlu1 %v1299_v8  ;;  %1249 = vset.pattern.permute.xlu2 %v1296_v62 }
 0x398   :  { %851 = vperm.xlu0 %1248, %v806_v61   ;;  %895 = vperm.xlu1 %1247, %v805_v46  }
 0x399   :  { %875 = vperm.xlu2 %1249, %v806_v61  }
 0x39a   :  { %v800_v53 = vpop.f32.mrf.mxu3 }
 0x39b   :  { %v801_v5 = vadd.f32 %v1437_v1, %v800_v53 }
 0x39d   :  { %v1649_v51 = vmax.f32 %v801_v5, 0.0 }
 0x3a0   :  { %1252 = vset.pattern.permute.xlu1 %v1296_v62 }
 0x3a1   :  { %1250 = vset.pattern.permute.xlu2 %v1299_v8  ;;  %879 = vperm.xlu1 %1252, %v1649_v51  }
 0x3a2   :  { %899 = vperm.xlu2 %1250, %v806_v61   ;;  %v802_v56 = vpop.f32.mrf.mxu3 }
 0x3a3   :  { %v803_v6 = vadd.f32 %v1437_v1, %v802_v56  ;;  %v1667_v1 = vpop.permute.xlu1 %473 }
 0x3a5   :  { %v1655_v13 = vmax.f32 %v803_v6, 0.0 }
 0x3a7   :  { %859 = vperm.xlu0 %1248, %v1655_v13  }
 0x3a9   :  { %1253 = vset.pattern.permute.xlu1 %v1299_v8 }
 0x3aa   :  { %1251 = vset.pattern.permute.xlu2 %v1297_v63  ;;  %903 = vperm.xlu1 %1253, %v1649_v51   ;;  %v1670_v63 = vpop.permute.xlu2 %477 }
 0x3ab   :  { %855 = vperm.xlu2 %1251, %v1649_v51   ;;  %v1675_v14 = vpop.permute.xlu1 %453 }
 0x3af   :  { %1258 = vset.pattern.permute.xlu0 %v1298_v0 }
 0x3b0   :  { %825 = vperm.xlu0 %1258, %v806_v61  }
 0x3b2   :  { %1254 = vset.pattern.permute.xlu1 %v1298_v0  ;;  %v637_v16 = vpop.permute.xlu2 %636 }
 0x3b3   :  { %1255 = vset.pattern.permute.xlu2 %v1296_v62  ;;  %395 = vperm.xlu1 %1254, %v1508_v9   ;;  %v633_v62 = vpop.permute.xlu1 %632 }
 0x3b4   :  { %883 = vperm.xlu2 %1255, %v1655_v13  }
 0x3b8   :  { %615 = vperm.xlu0 %1258, %v1616_v10  }
 0x3ba   :  { %v661_v9 = vpop.permute.xlu2 %660 }
 0x3bb   :  { %610 = vperm.xlu1 %1254, %v1609_v12   ;;  %v657_v10 = vpop.permute.xlu1 %656 }
 0x3bc   :  { %1256 = vset.pattern.permute.xlu2 %v1299_v8 }
 0x3bd   :  { %907 = vperm.xlu2 %1256, %v1655_v13  }
 0x3c2   :  { %v1681_v12 = vpop.permute.xlu2 %688 }
 0x3c3   :  { %400 = vperm.xlu1 %1254, %v1517_v15   ;;  %v685_v18 = vpop.permute.xlu1 %684  ;;  %v470_v15 = vpop.permute.xlu0 %469 }
 0x3c4   :  { %v481_v48 = vmul.f32 %v1560_v11, %v470_v15 }
 0x3c5   :  { %1257 = vset.pattern.permute.xlu2 %v1298_v0  ;;  %v1195_v0 = vld [vmem:[%s1855_s1 + $0x20] sm:$0xff]  }
 0x3c6   :  { %605 = vperm.xlu2 %1257, %v1604_v3   ;;  %v1697_v36 = vunpack.c.h.bf16 %v1195_v0  ;;  %v1699_v38 = vunpack.c.l.bf16 %v1195_v0 }
 0x3c8   :  { %v672_v42 = vmul.f32 %v1697_v36, %v661_v9  ;;  %v671_v45 = vmul.f32 %v1699_v38, %v657_v10  ;;  %v648_v9 = vmul.f32 %v1697_v36, %v637_v16  ;;  %v647_v10 = vmul.f32 %v1699_v38, %v633_v62 }
 0x3ca   :  { %v1683_v22 = vpop.permute.xlu2 %644  ;;  %v676_v30 = vadd.f32 %v672_v42, %v1594_v43  ;;  %v696_v43 = vmul.f32 %v1697_v36, %v685_v18  ;;  %v652_v16 = vadd.f32 %v648_v9, %v1564_v17  ;;  %v651_v62 = vadd.f32 %v647_v10, %v1585_v33  ;;  %v1198_v17 = vld [vmem:[%s1855_s1 + $0x38] sm:$0xff]  }
 0x3cb   :  { %v1685_v24 = vpop.permute.xlu1 %640  ;;  %v681_v34 = vpop.permute.xlu0 %680 }
 0x3ce   :  { %820 = vperm.xlu2 %1257, %v805_v46   ;;  %v460_v46 = vadd.f32 %v456_v35, %v249_v41 }
 0x3d0   :  { %v675_v61 = vadd.f32 %v671_v45, %v460_v46 }
 0x3d3   :  { %v669_v27 = vpop.permute.xlu1 %668  ;;  %v665_v53 = vpop.permute.xlu0 %664 }
 0x3d6   :  { %405 = vperm.xlu2 %1257, %v1527_v23   ;;  %v1197_v23 = vld [vmem:[%s1855_s1 + $0x30] sm:$0xff]  }
 0x3d7   :  { %v1701_v40 = vunpack.c.h.bf16 %v1197_v23  ;;  %v1707_v47 = vunpack.c.l.bf16 %v1197_v23  ;;  %v695_v23 = vmul.f32 %v1699_v38, %v681_v34 }
 0x3db   :  { %v1690_v3 = vpop.permute.xlu1 %692 }
 0x3e9   :  { %v848_v25 = vpop.permute.xlu2 %847 }
 0x3ea   :  { %v862_v41 = vmul.f32 %v1707_v47, %v848_v25 }
 0x3ec   :  { %v866_v25 = vadd.f32 %v862_v41, %v651_v62 }
 0x3f3   :  { %v876_v28 = vpop.permute.xlu2 %875 }
 0x3f4   :  { %v887_v32 = vmul.f32 %v1701_v40, %v876_v28  ;;  %v270_v28 = vmul.f32 %v1486_v52, %v1488_v54  ;;  %v699_v52 = vadd.f32 %v695_v23, %v1558_v7  ;;  %v1196_v54 = vld [vmem:[%s1855_s1 + $0x28] sm:$0xff]   ;;  %v459_v7 = vmul.f32 %v1583_v31, %v1675_v14  ;;  %s1301_s1 = smov 6  }
 0x3f6   :  { %v891_v56 = vadd.f32 %v887_v32, %v676_v30  ;;  %v485_v35 = vadd.f32 %v481_v48, %v270_v28  ;;  %v1737_v30 = vunpack.c.h.bf16 %v1196_v54  ;;  %v252_v48 = vmul.f32 %v1501_v60, %v1569_v19 }
 0x3f8   :  { %v700_v18 = vadd.f32 %v696_v43, %v485_v35  ;;  %v674_v10 = vmul.f32 %v1737_v30, %v669_v27  ;;  %v463_v14 = vadd.f32 %v459_v7, %v252_v48 }
 0x3fa   :  { %v678_v43 = vadd.f32 %v674_v10, %v463_v14 }
 0x3fc   :  { %v900_v39 = vpop.permute.xlu2 %899 }
 0x3fd   :  { %v911_v15 = vmul.f32 %v1701_v40, %v900_v39 }
 0x3ff   :  { %v915_v32 = vadd.f32 %v911_v15, %v700_v18  ;;  %v483_v15 = vmul.f32 %v1583_v31, %v1670_v63 }
 0x401   :  { %v872_v4 = vpop.permute.xlu1 %871 }
 0x402   :  { %v886_v5 = vmul.f32 %v1707_v47, %v872_v4  ;;  %v1735_v4 = vunpack.c.l.bf16 %v1196_v54 }
 0x404   :  { %v890_v6 = vadd.f32 %v886_v5, %v675_v61  ;;  %v1739_v61 = vunpack.c.h.bf16 %v1198_v17  ;;  %v673_v9 = vmul.f32 %v1735_v4, %v665_v53  ;;  %v649_v27 = vmul.f32 %v1735_v4, %v1685_v24 }
 0x405   :  { %v856_v49 = vpop.permute.xlu2 %855  ;;  %v697_v24 = vmul.f32 %v1735_v4, %v1681_v12 }
 0x406   :  { %v1264_v0 = vpack.i.bf16 %v891_v56, %v890_v6  ;;  %v677_v19 = vadd.f32 %v673_v9, %v1577_v26  ;;  %v271_v26 = vmul.f32 %v1496_v57, %v1549_v58  ;;  %v653_v57 = vadd.f32 %v649_v27, %v1601_v50 }
 0x408   :  { %1265 = vrot.lane.b32.xlu2 %v1264_v0, %s1300_s15  ;;  %v1748_v0 = vunpack.c.l.bf16 %v1198_v17 }
 0x40a   :  { %v852_v42 = vpop.permute.xlu0 %851  ;;  %v896_v45 = vpop.permute.xlu1 %895 }
 0x40b   :  { %v863_v34 = vmul.f32 %v1701_v40, %v852_v42  ;;  %v910_v46 = vmul.f32 %v1707_v47, %v896_v45  ;;  %v864_v42 = vmul.f32 %v1748_v0, %v856_v49 }
 0x40d   :  { %v867_v33 = vadd.f32 %v863_v34, %v652_v16  ;;  %v914_v39 = vadd.f32 %v910_v46, %v699_v52  ;;  %v482_v16 = vmul.f32 %v1571_v20, %v1667_v1  ;;  %v698_v52 = vmul.f32 %v1737_v30, %v1690_v3 }
 0x40e   :  { %v884_v5 = vpop.permute.xlu2 %883  ;;  %v868_v49 = vadd.f32 %v864_v42, %v653_v57 }
 0x40f   :  { %v1259_v56 = vpack.i.bf16 %v867_v33, %v866_v25  ;;  %v1269_v6 = vpack.i.bf16 %v915_v32, %v914_v39  ;;  %v889_v28 = vmul.f32 %v1739_v61, %v884_v5 }
 0x410   :  { %830 = vperm.xlu2 %1257, %v1649_v51   ;;  %v650_v51 = vmul.f32 %v1737_v30, %v1683_v22  ;;  %v272_v22 = vmul.f32 %v1501_v60, %v1573_v21  ;;  %v486_v21 = vadd.f32 %v482_v16, %v271_v26 }
 0x411   :  { %1260 = vrot.lane.b32.xlu1 %v1259_v56, %s1301_s1  ;;  %1270 = vrot.lane.b32.xlu0 %v1269_v6, %s1302_s18  ;;  %v893_v35 = vadd.f32 %v889_v28, %v678_v43  ;;  %v1025_v43 = vld [vmem:[%s1858_s10] sm:$0xff] }
 0x412   :  { %v654_v63 = vadd.f32 %v650_v51, %v1589_v37  ;;  %v487_v60 = vadd.f32 %v483_v15, %v272_v22  ;;  %v701_v18 = vadd.f32 %v697_v24, %v486_v21 }
 0x413   :  { %v880_v23 = vpop.permute.xlu1 %879 }
 0x414   :  { %v888_v53 = vmul.f32 %v1748_v0, %v880_v23 }
 0x416   :  { %v892_v41 = vadd.f32 %v888_v53, %v677_v19  ;;  %v1026_v53 = vld [vmem:[%s1858_s10 + $0x8] sm:$0xff] }
 0x417   :  { %v908_v62 = vpop.permute.xlu2 %907  ;;  %v1027_v51 = vpack.c.bf16 %v1026_v53, %v1025_v43  ;;  %v1294_v53 = vld [vmem:[%s1859_s11] ss:$0 sm:$0xff] }
 0x418   :  { %v1279_v45 = vpack.i.bf16 %v893_v35, %v892_v41  ;;  %v913_v12 = vmul.f32 %v1739_v61, %v908_v62 }
 0x419   :  { %620 = vperm.xlu1 %1254, %v1631_v29   ;;  %835 = vperm.xlu0 %1258, %v1655_v13   ;;  %v860_v1 = vpop.permute.xlu0 %859  ;;  %v702_v29 = vadd.f32 %v698_v52, %v487_v60 }
 0x41a   :  { %v865_v58 = vmul.f32 %v1739_v61, %v860_v1  ;;  %1280 = vrot.lane.b32.xlu2 %v1279_v45, %s1300_s15  ;;  %1048 = vmatpush.bf16.msrb.mxu1 %v1027_v51 }
 0x41b   :  { %v917_v46 = vadd.f32 %v913_v12, %v702_v29 }
 0x41c   :  { %v869_v54 = vadd.f32 %v865_v58, %v654_v63  ;;  %v904_v3 = vpop.permute.xlu1 %903 }
 0x41d   :  { %v912_v13 = vmul.f32 %v1748_v0, %v904_v3 }
 0x41e   :  { %v1274_v34 = vpack.i.bf16 %v869_v54, %v868_v49 }
 0x41f   :  { %v916_v37 = vadd.f32 %v912_v13, %v701_v18 }
 0x420   :  { %v606_v25 = vpop.permute.xlu2 %605 }
 0x421   :  { %1275 = vrot.lane.b32.xlu1 %v1274_v34, %s1301_s1  ;;  %v1284_v50 = vpack.i.bf16 %v917_v46, %v916_v37  ;;  %1289 = vset.pattern.permute.xlu0 %v1299_v8  ;;  %v623_v32 = vmul.f32 %v1699_v38, %v606_v25  ;;  %v983_v38 = vld [vmem:[%s1857_s8 + $0x10] sm:$0xff] }
 0x422   :  { %v826_v6 = vpop.permute.xlu0 %825 }
 0x423   :  { %1285 = vrot.lane.b32.xlu0 %v1284_v50, %s1302_s18  ;;  %v627_v39 = vadd.f32 %v623_v32, %v1597_v44  ;;  %v839_v8 = vmul.f32 %v1701_v40, %v826_v6  ;;  %v985_v44 = vpack.c.bf16 %v983_v38, %v983_v38 }
 0x425   :  { %v396_v17 = vpop.permute.xlu1 %395 }
 0x426   :  { %v409_v5 = vmul.f32 %v1560_v11, %v396_v17  ;;  %v981_v11 = vld [vmem:[%s1857_s8] sm:$0xff] }
 0x428   :  { %v821_v33 = vpop.permute.xlu2 %820  ;;  %v413_v9 = vadd.f32 %v409_v5, %v1491_v55  ;;  %v982_v55 = vld [vmem:[%s1857_s8 + $0x8] sm:$0xff] }
 0x429   :  { %v838_v7 = vmul.f32 %v1707_v47, %v821_v33  ;;  %v1000_v47 = vsel %vm114_vm3, %v985_v44, 0 }
 0x42a   :  { %1008 = vmatpush.bf16.msrb.mxu0 %v1000_v47  ;;  %v616_v23 = vpop.permute.xlu0 %615 }
 0x42b   :  { %v842_v56 = vadd.f32 %v838_v7, %v627_v39  ;;  %v625_v13 = vmul.f32 %v1735_v4, %v616_v23 }
 0x42d   :  { %v611_v48 = vpop.permute.xlu1 %610 }
 0x42e   :  { %v624_v10 = vmul.f32 %v1697_v36, %v611_v48  ;;  %v984_v36 = vpack.c.bf16 %v982_v55, %v981_v11 }
 0x430   :  { %v628_v14 = vadd.f32 %v624_v10, %v413_v9  ;;  %1009 = vmatpush.bf16.msrb.mxu0 %v984_v36  ;;  %v406_v40 = vpop.permute.xlu2 %405  ;;  %v1293_v10 = vld [vmem:[%s1856_s9] ss:$0 sm:$0xff] }
 0x431   :  { %v411_v60 = vmul.f32 %v1583_v31, %v406_v40 }
 0x432   :  { %v843_v28 = vadd.f32 %v839_v8, %v628_v14 }
 0x433   :  { %v415_v18 = vadd.f32 %v411_v60, %v1504_v2 }
 0x435   :  { %v401_v19 = vpop.permute.xlu1 %400 }
 0x436   :  { %v410_v21 = vmul.f32 %v1571_v20, %v401_v19 }
 0x438   :  { %v414_v29 = vadd.f32 %v410_v21, %v1499_v59 }
 0x43a   :  { %v629_v37 = vadd.f32 %v625_v13, %v414_v29 }
 0x462   :  { %v1266_v27 = vpop.permute.xlu2 %1265 }
 0x463   :  { %v1268_v42 = vunpack.i.h.bf16 %v1266_v27  ;;  %v1267_v45 = vunpack.i.l.bf16 %v1266_v27 }
 0x46a   :  { %v831_v12 = vpop.permute.xlu2 %830 }
 0x46b   :  { %v840_v34 = vmul.f32 %v1748_v0, %v831_v12 }
 0x46d   :  { %v844_v50 = vadd.f32 %v840_v34, %v629_v37 }
 0x474   :  { %v1281_v20 = vpop.permute.xlu2 %1280 }
 0x475   :  { %v1282_v39 = vunpack.i.l.bf16 %v1281_v20 }
 0x483   :  { %v1261_v35 = vpop.permute.xlu1 %1260  ;;  %v1271_v41 = vpop.permute.xlu0 %1270 }
 0x484   :  { %v1263_v15 = vunpack.i.h.bf16 %v1261_v35  ;;  %v1262_v16 = vunpack.i.l.bf16 %v1261_v35  ;;  %v1273_v62 = vunpack.i.h.bf16 %v1271_v41  ;;  %v1272_v26 = vunpack.i.l.bf16 %v1271_v41 }
 0x486   :  { %v967_v22 = vsel %vm966_vm5, %v842_v56, %v1262_v16  ;;  %v968_v24 = vsel %vm966_vm5, %v843_v28, %v1263_v15 }
 0x487   :  { %v972_v52 = vsel %vm971_vm6, %v967_v22, %v1267_v45  ;;  %v973_v1 = vsel %vm971_vm6, %v968_v24, %v1268_v42 }
 0x488   :  { %v978_v63 = vsel %vm976_vm7, %v973_v1, %v1273_v62  ;;  %v977_v57 = vsel %vm976_vm7, %v972_v52, %v1272_v26 }
 0x489   :  { %v986_v58 = vpack.c.bf16 %v978_v63, %v977_v57 }
 0x48b   :  { %v621_v49 = vpop.permute.xlu1 %620  ;;  %1148 = vmatmul.msk.bf16.vlgmr.msrb.gmra.mxu0 %vm992_vm8, %v986_v58  ;;  %v836_v3 = vpop.permute.xlu0 %835 }
 0x48c   :  { %v626_v54 = vmul.f32 %v1737_v30, %v621_v49  ;;  %v841_v31 = vmul.f32 %v1739_v61, %v836_v3  ;;  %v1283_v30 = vunpack.i.h.bf16 %v1281_v20 }
 0x48e   :  { %v630_v46 = vadd.f32 %v626_v54, %v415_v18 }
 0x490   :  { %v845_v32 = vadd.f32 %v841_v31, %v630_v46 }
 0x493   :  { %v1276_v25 = vpop.permute.xlu1 %1275 }
 0x494   :  { %v1278_v17 = vunpack.i.h.bf16 %v1276_v25  ;;  %v1277_v33 = vunpack.i.l.bf16 %v1276_v25 }
 0x495   :  { %v1286_v7 = vpop.permute.xlu0 %1285 }
 0x496   :  { %v969_v2 = vsel %vm966_vm5, %v844_v50, %v1277_v33  ;;  %v970_v59 = vsel %vm966_vm5, %v845_v32, %v1278_v17  ;;  %v1288_v4 = vunpack.i.h.bf16 %v1286_v7  ;;  %v1287_v5 = vunpack.i.l.bf16 %v1286_v7 }
 0x497   :  { %v974_v0 = vsel %vm971_vm6, %v969_v2, %v1282_v39  ;;  %v975_v61 = vsel %vm971_vm6, %v970_v59, %v1283_v30 }
 0x498   :  { %v979_v56 = vsel %vm976_vm7, %v974_v0, %v1287_v5  ;;  %v980_v6 = vsel %vm976_vm7, %v975_v61, %v1288_v4 }
 0x499   :  { %v987_v48 = vpack.c.bf16 %v980_v6, %v979_v56 }
 0x49b   :  { %1149 = vmatmul.msk.bf16.gmra.mxu0 %vm992_vm8, %v987_v48 }
 0x508   :  { %v1011_v9 = vpop.f32.mrf.mxu0 }
 0x509   :  { %v1012_v8 = vadd.f32 %v1293_v10, %v1011_v9 }
 0x50b   :  { %v1021_v38 = vmax.f32 %v1012_v8, 0.0 }
 0x510   :  { %v1013_v14 = vpop.f32.mrf.mxu0 }
 0x511   :  { %v1014_v28 = vadd.f32 %v1293_v10, %v1013_v14 }
 0x513   :  { %v1022_v44 = vmax.f32 %v1014_v28, 0.0 }
 0x515   :  { %v1028_v47 = vpack.c.bf16 %v1022_v44, %v1021_v38 }
 0x517   :  { %1150 = vmatmul.msk.bf16.vlgmr.msrb.gmra.mxu1 %vm1034_vm9, %v1028_v47 }
 0x518   :  { %v1016_v11 = vpop.f32.mrf.mxu0 }
 0x519   :  { %v1017_v55 = vadd.f32 %v1293_v10, %v1016_v11 }
 0x51b   :  { %v1023_v23 = vmax.f32 %v1017_v55, 0.0 }
 0x520   :  { %v1018_v36 = vpop.f32.mrf.mxu0 }
 0x521   :  { %v1019_v40 = vadd.f32 %v1293_v10, %v1018_v36 }
 0x523   :  { %v1024_v19 = vmax.f32 %v1019_v40, 0.0 }
 0x525   :  { %v1029_v43 = vpack.c.bf16 %v1024_v19, %v1023_v23 }
 0x527   :  { %1151 = vmatmul.msk.bf16.gmra.mxu1 %vm1034_vm9, %v1029_v43 }
 0x594   :  { %v1050_v51 = vpop.f32.mrf.mxu1 }
 0x595   :  { %v1051_v27 = vadd.f32 %v1294_v53, %v1050_v51 }
 0x597   :  { %1060 = vst.msk [vmem:[%s1860_s12] sm:$0xff] %vm107_vm4, %v1051_v27 }
 0x59c   :  { %v1052_v35 = vpop.f32.mrf.mxu1 }
 0x59d   :  { %v1053_v41 = vadd.f32 %v1294_v53, %v1052_v35 }
 0x59f   :  { %1061 = vst.msk [vmem:[%s1860_s12 + $0x8] sm:$0xff] %vm107_vm4, %v1053_v41 }
 0x5a4   :  { %v1055_v15 = vpop.f32.mrf.mxu1 }
 0x5a5   :  { %v1056_v16 = vadd.f32 %v1294_v53, %v1055_v15 }
 0x5a7   :  { %1062 = vst.msk [vmem:[%s1860_s12 + $0x10] sm:$0xff] %vm107_vm4, %v1056_v16 }
 0x5ac   :  { %v1057_v62 = vpop.f32.mrf.mxu1 }
 0x5ad   :  { %v1058_v26 = vadd.f32 %v1294_v53, %v1057_v62 }
 0x5af   :  { %1063 = vst.msk [vmem:[%s1860_s12 + $0x18] sm:$0xff] %vm107_vm4, %v1058_v26 }

</bundles_post_ra>
